<compile_context>
chip_gen: v5e
topology: v5e:2x2
jax: 0.10.0
libtpu: 0.0.40
codegen_flags: <defaults>
</compile_context>

<pallas_src>
import math

import jax
import jax.numpy as jnp
from jax.experimental import pallas as pl
from jax.experimental.pallas import tpu as pltpu

# ---------------------------------------------------------------------------
# Model hyper-parameters (small, consistent with the module's forward pass).
# ---------------------------------------------------------------------------
D_MODEL = 32
NUM_HEADS = 4
D_K = 64                       # per-head dim of the meshed-memory MHA
HDK = NUM_HEADS * D_K          # 256
PARAM_N = 100                  # self.param = nn.Parameter(torch.zeros(d_model, 100))
PARAM_PAD = 128                # lane-aligned padding of the mixing matrix
BATCH = 2
SEQ = 8
WIDE_COLS = 2 * HDK + D_MODEL  # 544 = [K | V | additive-attn features]
H1_COLS = HDK + D_MODEL        # 288 = [MHA query | additive-attn query]

PARAM_ORDER = [
    "w_ih1", "w_hh1", "b_ih1", "b_hh1",
    "param",
    "wa1", "ba1", "wa2", "ba2", "va",
    "w_ih2", "w_hh2", "b_ih2", "b_hh2",
    "wq", "bq", "wk", "bk", "wv", "bv", "wo", "bo",
    "wl", "bl", "wl1", "bl1", "wl2", "bl2", "wl3", "bl3",
]

# ---------------------------------------------------------------------------
# Static row layout of the two packed weight buffers (all offsets 8-aligned).
# ---------------------------------------------------------------------------
def _round8(n):
    return -(-n // 8) * 8


def _alloc(cur, rows):
    return cur, cur + _round8(rows)


_c = 0
OFF_W1, _c = _alloc(_c, 3 * D_MODEL)        # [w_ih1 ; w_hh1]    (96, 128)
OFF_B1, _c = _alloc(_c, 1)                  # b_ih1 + b_hh1      (1, 128)
OFF_W2, _c = _alloc(_c, 3 * D_MODEL)        # [w_ih2 ; w_hh2]    (96, 128)
OFF_B2, _c = _alloc(_c, 1)                  # b_ih2 + b_hh2      (1, 128)
OFF_PARAM, _c = _alloc(_c, D_MODEL)         # param (32, 100->128)
OFF_PARAM_T, _c = _alloc(_c, PARAM_PAD)     # param.T (100->128, 32)
OFF_PARAM_BIAS, _c = _alloc(_c, 1)          # -1e9 on padded logit lanes
OFF_VA, _c = _alloc(_c, 1)                  # additive scoring vector (1, 32)
OFF_WO, _c = _alloc(_c, HDK)                # MHA out-proj (256, 32)
OFF_BO, _c = _alloc(_c, 1)                  # (1, 32)
OFF_WFV, _c = _alloc(_c, 2 * D_MODEL)       # [wl | wl1] (64, 64)
OFF_BFV, _c = _alloc(_c, 1)                 # [bl | bl1] (1, 64)
OFF_WQ2, _c = _alloc(_c, D_MODEL)           # [wl2 | wl3] (32, 64)
OFF_BQ2, _c = _alloc(_c, 1)                 # [bl2 | bl3] (1, 64)
WBUF_ROWS = _c                              # 760

_c2 = 0
OFF_WENC, _c2 = _alloc(_c2, D_MODEL)        # [wk | wv | wa1] (32, 544)
OFF_BENC, _c2 = _alloc(_c2, 1)              # [bk | bv | ba1] (1, 544)
OFF_WH1, _c2 = _alloc(_c2, D_MODEL)         # [wq | wa2]      (32, 288)
OFF_BH1, _c2 = _alloc(_c2, 1)               # [bq | ba2]      (1, 288)
WWIDE_ROWS = _c2                            # 80


# ---------------------------------------------------------------------------
# In-kernel helpers (traced inside the Pallas body).
# ---------------------------------------------------------------------------
def _masked_softmax(scores, mask):
    # scores: (..., S); mask broadcastable, 1 = valid, 0 = masked.
    scores = scores + (1.0 - mask) * (-1e9)
    m = jnp.max(scores, axis=-1, keepdims=True)
    e = jnp.exp(scores - m)
    return e / jnp.sum(e, axis=-1, keepdims=True)


def _softmax(x):
    m = jnp.max(x, axis=-1, keepdims=True)
    e = jnp.exp(x - m)
    return e / jnp.sum(e, axis=-1, keepdims=True)


def _lstm_cell(x_cat, c, w, b, d):
    """Fused LSTMCell: ONE (B,3d)@(3d,4d) dot, one full-width sigmoid + tanh."""
    gates = jnp.dot(x_cat, w, preferred_element_type=jnp.float32) + b   # (B, 4d)
    sig = jax.nn.sigmoid(gates)
    tg = jnp.tanh(gates)
    i = sig[:, 0:d]
    f = sig[:, d:2 * d]
    g = tg[:, 2 * d:3 * d]
    o = sig[:, 3 * d:4 * d]
    c_new = f * c + i * g
    h_new = o * jnp.tanh(c_new)
    return h_new, c_new


# ---------------------------------------------------------------------------
# The fused decoder-layer kernel (everything VMEM-resident, no grid).
# ---------------------------------------------------------------------------
def _decoder_kernel(next_word_ref, enc_mean_ref, enc_out_ref, h_state_ref,
                    c_state_ref, mask_ref, wbuf_ref, wwide_ref, out_ref):
    B, S, d = enc_out_ref.shape
    H = NUM_HEADS
    dk = D_K
    hdk = HDK
    scale = 1.0 / math.sqrt(dk)

    # ---- previous state ----------------------------------------------------
    h0 = h_state_ref[0]                          # (B, d)
    h1 = h_state_ref[1]
    h2 = h_state_ref[2]
    c0 = c_state_ref[0]
    c1 = c_state_ref[1]

    next_word = next_word_ref[...]               # (B, d)
    enc = enc_out_ref[...]                       # (B, S, d)
    mask = mask_ref[...]                         # (B, S)
    mask3 = mask[:, None, :]                     # (B, 1, S)

    # ---- enc_hid + first LSTM cell (single fused gate matmul) ---------------
    enc_hid = (enc_mean_ref[...] + h1 + h2) * (1.0 / 3.0)
    x1 = jnp.concatenate([enc_hid, next_word, h0], axis=1)          # (B, 3d)
    h_1, c_1 = _lstm_cell(x1, c0,
                          wbuf_ref[OFF_W1:OFF_W1 + 3 * d, :],
                          wbuf_ref[OFF_B1:OFF_B1 + 1, :], d)

    # ---- param softmax mixing (128-lane aligned) -----------------------------
    logits = (jnp.dot(h_1, wbuf_ref[OFF_PARAM:OFF_PARAM + d, :],
                      preferred_element_type=jnp.float32)
              + wbuf_ref[OFF_PARAM_BIAS:OFF_PARAM_BIAS + 1, :])     # (B, 128)
    sm = _softmax(logits)
    mixed = jnp.dot(sm, wbuf_ref[OFF_PARAM_T:OFF_PARAM_T + PARAM_PAD, 0:d],
                    preferred_element_type=jnp.float32)             # (B, d)
    # TODO(synk): F.dropout(F.relu(.)) treated as identity dropout (eval mode).
    h_1_new = jax.nn.relu(mixed) + h_1

    # ---- single fused MXU pass over encoder output: K | V | attn features ----
    enc_flat = enc.reshape(B * S, d)
    enc_proj = (jnp.dot(enc_flat, wwide_ref[OFF_WENC:OFF_WENC + d, :],
                        preferred_element_type=jnp.float32)
                + wwide_ref[OFF_BENC:OFF_BENC + 1, :])              # (B*S, 544)
    k_flat = enc_proj[:, 0:hdk]                                     # (B*S, 256)
    v_flat = enc_proj[:, hdk:2 * hdk]                               # (B*S, 256)
    feat = enc_proj[:, 2 * hdk:2 * hdk + d].reshape(B, S, d)        # (B, S, d)

    # ---- fused h_1_new projection: [MHA query | additive query] --------------
    h1proj = (jnp.dot(h_1_new, wwide_ref[OFF_WH1:OFF_WH1 + d, 0:H1_COLS],
                      preferred_element_type=jnp.float32)
              + wwide_ref[OFF_BH1:OFF_BH1 + 1, 0:H1_COLS])          # (B, 288)
    q_all = h1proj[:, 0:hdk]                                        # (B, 256)
    q_proj = h1proj[:, hdk:hdk + d]                                 # (B, d)

    # ---- additive attention: context v_ctx, projected query _q ---------------
    e_att = jnp.tanh(feat + q_proj[:, None, :])                     # (B, S, d)
    va_row = wbuf_ref[OFF_VA:OFF_VA + 1, 0:d]                       # (1, d)
    va_b = jnp.broadcast_to(va_row[None, :, :], (B, 1, d))          # (B, 1, d)
    score = jnp.einsum("bqd,bkd->bqk", va_b, e_att,
                       preferred_element_type=jnp.float32)          # (B, 1, S)
    alpha = _masked_softmax(score, mask3)
    v_ctx = jnp.einsum("bqk,bkd->bqd", alpha, enc,
                       preferred_element_type=jnp.float32).reshape(B, d)
    _q = q_proj
    # TODO(synk): _q returned as the pre-tanh linear projection of the query
    # (Attention class not provided in the spec; assumption carried over).

    # ---- second LSTM cell (single fused gate matmul) --------------------------
    x2 = jnp.concatenate([h_1_new, v_ctx, h1], axis=1)              # (B, 3d)
    h_2, c_2 = _lstm_cell(x2, c1,
                          wbuf_ref[OFF_W2:OFF_W2 + 3 * d, :],
                          wbuf_ref[OFF_B2:OFF_B2 + 1, :], d)

    # ---- multi-head attention: all heads in one batch axis, one softmax -------
    # Fold heads into the leading (batch) axis via cheap leading-axis concats of
    # lane slices; avoids 4-D transposes entirely.
    k_hb = jnp.concatenate(
        [k_flat[:, h * dk:(h + 1) * dk].reshape(B, S, dk) for h in range(H)],
        axis=0)                                                     # (H*B, S, dk)
    v_hb = jnp.concatenate(
        [v_flat[:, h * dk:(h + 1) * dk].reshape(B, S, dk) for h in range(H)],
        axis=0)                                                     # (H*B, S, dk)
    q_hb = jnp.concatenate(
        [q_all[:, h * dk:(h + 1) * dk] for h in range(H)],
        axis=0)[:, None, :]                                         # (H*B, 1, dk)
    mask_hb = jnp.concatenate([mask3] * H, axis=0)                  # (H*B, 1, S)

    sc = jnp.einsum("bqd,bkd->bqk", q_hb, k_hb,
                    preferred_element_type=jnp.float32) * scale     # (H*B, 1, S)
    at = _masked_softmax(sc, mask_hb)                               # one softmax
    ctx = jnp.einsum("bqk,bkd->bqd", at, v_hb,
                     preferred_element_type=jnp.float32).reshape(H * B, dk)
    ctx_flat = jnp.concatenate(
        [ctx[h * B:(h + 1) * B, :] for h in range(H)], axis=1)      # (B, 256)
    mha = jnp.dot(ctx_flat, wbuf_ref[OFF_WO:OFF_WO + hdk, 0:d],
                  preferred_element_type=jnp.float32)               # (B, d)
    fv_vec = mha + wbuf_ref[OFF_BO:OFF_BO + 1, 0:d] + h_1_new       # (B, d)

    # ---- gated output: fused linears [wl|wl1] on cat(fv, v) and [wl2|wl3] -----
    fv_cat = jnp.concatenate([fv_vec, v_ctx], axis=1)               # (B, 2d)
    lin_fv = jax.nn.relu(
        jnp.dot(fv_cat, wbuf_ref[OFF_WFV:OFF_WFV + 2 * d, 0:2 * d],
                preferred_element_type=jnp.float32)
        + wbuf_ref[OFF_BFV:OFF_BFV + 1, 0:2 * d])                   # (B, 2d)
    lin_q = jax.nn.relu(
        jnp.dot(_q, wbuf_ref[OFF_WQ2:OFF_WQ2 + d, 0:2 * d],
                preferred_element_type=jnp.float32)
        + wbuf_ref[OFF_BQ2:OFF_BQ2 + 1, 0:2 * d])                   # (B, 2d)
    s_gate = lin_fv + lin_q
    i_gate = s_gate[:, 0:d]                       # i = relu(linear(fv)) + relu(linear2(_q))
    g_gate = jax.nn.sigmoid(s_gate[:, d:2 * d])   # g = sigmoid(relu(linear1(fv)) + relu(linear3(_q)))
    h_3 = g_gate * i_gate                         # (B, d)

    # ---- one lane-dense packed store: [h_1 | h_2 | h_3 | c_1 | c_2 | pad] -----
    pad = jnp.zeros((B, 3 * d), jnp.float32)
    out_ref[...] = jnp.concatenate([h_1, h_2, h_3, c_1, c_2, pad], axis=1)


# ---------------------------------------------------------------------------
# Wrapper: no batch padding, full arrays in VMEM, no grid, 8 input DMAs total.
# ---------------------------------------------------------------------------
@jax.jit
def parallel_decoder_layer(next_word, enc_output_mean, enc_output,
                           h_state, c_state, sg_mask, wbuf, wwide):
    B, d = next_word.shape
    S = enc_output.shape[1]

    flops = 2 * B * (
        2 * 3 * d * 4 * d                 # two fused LSTM gate matmuls
        + d * PARAM_PAD + PARAM_PAD * d   # param mixing
        + S * d * WIDE_COLS               # fused encoder projection
        + d * H1_COLS                     # fused h_1_new projection
        + 2 * S * d                       # additive score + context
        + 2 * NUM_HEADS * S * D_K         # MHA scores + contexts
        + HDK * d                         # MHA output projection
        + 2 * d * 2 * d + d * 2 * d)      # gating linears
    bytes_accessed = 4 * (WBUF_ROWS * 128 + WWIDE_ROWS * WIDE_COLS
                          + B * (2 * d + S * d + 5 * d + S + 8 * d))
    transcendentals = B * (2 * (2 * 4 * d + d) + PARAM_PAD
                           + S * d + 2 * S + 2 * NUM_HEADS * S + 4 * d)

    vmem = pl.BlockSpec(memory_space=pltpu.MemorySpace.VMEM)
    out = pl.pallas_call(
        _decoder_kernel,
        out_shape=jax.ShapeDtypeStruct((B, 8 * d), jnp.float32),
        in_specs=[vmem] * 8,
        out_specs=vmem,
        cost_estimate=pl.CostEstimate(flops=flops,
                                      transcendentals=transcendentals,
                                      bytes_accessed=bytes_accessed),
        compiler_params=pltpu.CompilerParams(),
    )(next_word, enc_output_mean, enc_output, h_state, c_state, sg_mask,
      wbuf, wwide)

    # Unpack the lane-dense result (XLA-side, outside the kernel).
    h_1 = out[:, 0:d]
    h_2 = out[:, d:2 * d]
    h_3 = out[:, 2 * d:3 * d]
    c_1 = out[:, 3 * d:4 * d]
    c_2 = out[:, 4 * d:5 * d]
    next_word_out = out[:, d:3 * d]               # cat(h_2, h_3)
    return next_word_out, jnp.stack([h_1, h_2, h_3]), jnp.stack([c_1, c_2])


# ---------------------------------------------------------------------------
# Static weight fusing + packing into two contiguous buffers (done once).
# ---------------------------------------------------------------------------
def preprocess_params(params, d=D_MODEL, param_n=PARAM_N):
    def put(buf, row, arr):
        r, c = arr.shape
        return buf.at[row:row + r, 0:c].set(arr.astype(jnp.float32))

    wbuf = jnp.zeros((WBUF_ROWS, 128), jnp.float32)
    # LSTM 1: x = cat(enc_hid, next_word, h_prev) @ [w_ih1 ; w_hh1]
    wbuf = put(wbuf, OFF_W1, jnp.concatenate([params["w_ih1"], params["w_hh1"]], axis=0))
    wbuf = put(wbuf, OFF_B1, params["b_ih1"] + params["b_hh1"])
    # LSTM 2: x = cat(h_1_new, v_ctx, h_prev) @ [w_ih2 ; w_hh2]
    wbuf = put(wbuf, OFF_W2, jnp.concatenate([params["w_ih2"], params["w_hh2"]], axis=0))
    wbuf = put(wbuf, OFF_B2, params["b_ih2"] + params["b_hh2"])
    # Mixing matrix padded to 128 lanes + -1e9 logit bias on the padded lanes.
    wbuf = put(wbuf, OFF_PARAM, params["param"])             # (d, 100) -> lanes 0:100
    wbuf = put(wbuf, OFF_PARAM_T, params["param"].T)         # (100, d) -> rows 0:100
    bias = jnp.where(jnp.arange(128) < param_n, 0.0, -1e9).astype(jnp.float32)[None, :]
    wbuf = put(wbuf, OFF_PARAM_BIAS, bias)
    # Additive-attention scoring vector (row layout).
    wbuf = put(wbuf, OFF_VA, params["va"])
    # MHA output projection.
    wbuf = put(wbuf, OFF_WO, params["wo"])
    wbuf = put(wbuf, OFF_BO, params["bo"])
    # Fused gating linears: [i-branch | g-branch] columns.
    wbuf = put(wbuf, OFF_WFV, jnp.concatenate([params["wl"], params["wl1"]], axis=1))
    wbuf = put(wbuf, OFF_BFV, jnp.concatenate([params["bl"], params["bl1"]], axis=1))
    wbuf = put(wbuf, OFF_WQ2, jnp.concatenate([params["wl2"], params["wl3"]], axis=1))
    wbuf = put(wbuf, OFF_BQ2, jnp.concatenate([params["bl2"], params["bl3"]], axis=1))

    wwide = jnp.zeros((WWIDE_ROWS, WIDE_COLS), jnp.float32)
    # Fused encoder projection: [wk | wv | wa1].
    wwide = put(wwide, OFF_WENC,
                jnp.concatenate([params["wk"], params["wv"], params["wa1"]], axis=1))
    wwide = put(wwide, OFF_BENC,
                jnp.concatenate([params["bk"], params["bv"], params["ba1"]], axis=1))
    # Fused h_1_new projection: [wq | wa2].
    wwide = put(wwide, OFF_WH1, jnp.concatenate([params["wq"], params["wa2"]], axis=1))
    wwide = put(wwide, OFF_BH1, jnp.concatenate([params["bq"], params["ba2"]], axis=1))
    return {"wbuf": wbuf, "wwide": wwide}


# ---------------------------------------------------------------------------
# Deterministic parameter construction (synthetic; no checkpoint loading).
# ---------------------------------------------------------------------------
def init_params(key, d, num_heads, d_k, param_n):
    hdk = num_heads * d_k
    shapes = {
        # LSTM cell 1 (input 2d -> hidden d); stored as (in, 4d) for x @ W,
        # gate column order i | f | g | o (PyTorch LSTMCell order, transposed).
        "w_ih1": (2 * d, 4 * d), "w_hh1": (d, 4 * d),
        "b_ih1": (1, 4 * d), "b_hh1": (1, 4 * d),
        # learned mixing matrix
        "param": (d, param_n),
        # additive attention
        "wa1": (d, d), "ba1": (1, d), "wa2": (d, d), "ba2": (1, d), "va": (1, d),
        # LSTM cell 2
        "w_ih2": (2 * d, 4 * d), "w_hh2": (d, 4 * d),
        "b_ih2": (1, 4 * d), "b_hh2": (1, 4 * d),
        # multi-head attention
        "wq": (d, hdk), "bq": (1, hdk),
        "wk": (d, hdk), "bk": (1, hdk),
        "wv": (d, hdk), "bv": (1, hdk),
        "wo": (hdk, d), "bo": (1, d),
        # gating linears
        "wl": (2 * d, d), "bl": (1, d),
        "wl1": (2 * d, d), "bl1": (1, d),
        "wl2": (d, d), "bl2": (1, d),
        "wl3": (d, d), "bl3": (1, d),
    }
    keys = jax.random.split(key, len(PARAM_ORDER))
    params = {}
    for k, name in zip(keys, PARAM_ORDER):
        shape = shapes[name]
        fan_in = shape[0] if shape[0] > 1 else shape[-1]
        scale = 1.0 / math.sqrt(fan_in)
        params[name] = (jax.random.uniform(k, shape, jnp.float32, -1.0, 1.0)
                        * scale).astype(jnp.float32)
    return params


if __name__ == "__main__":
    key = jax.random.PRNGKey(0)
    k_in, k_par = jax.random.split(key)
    k1, k2, k3, k4 = jax.random.split(k_in, 4)

    next_word = jax.random.normal(k1, (BATCH, D_MODEL), jnp.float32)
    enc_output = jax.random.normal(k2, (BATCH, SEQ, D_MODEL), jnp.float32)
    enc_output_mean = jnp.mean(enc_output, axis=1)
    h_state = jax.random.normal(k3, (3, BATCH, D_MODEL), jnp.float32) * 0.1
    c_state = jax.random.normal(k4, (2, BATCH, D_MODEL), jnp.float32) * 0.1
    sg_mask = jnp.ones((BATCH, SEQ), jnp.float32).at[1, SEQ - 2:].set(0.0)

    params = init_params(k_par, D_MODEL, NUM_HEADS, D_K, PARAM_N)
    packed = preprocess_params(params)

    next_word_out, h_out, c_out = parallel_decoder_layer(
        next_word, enc_output_mean, enc_output, h_state, c_state, sg_mask,
        packed["wbuf"], packed["wwide"])
    jax.block_until_ready((next_word_out, h_out, c_out))

    assert next_word_out.shape == (BATCH, 2 * D_MODEL)
    assert h_out.shape == (3, BATCH, D_MODEL)
    assert c_out.shape == (2, BATCH, D_MODEL)
    assert bool(jnp.all(jnp.isfinite(next_word_out)))
    assert bool(jnp.all(jnp.isfinite(h_out))) and bool(jnp.all(jnp.isfinite(c_out)))
    print("KERNEL_OK")
</pallas_src>

<mosaic_0001>
module attributes {stable_mosaic.version = 11 : i64} {
  func.func @_decoder_kernel(%arg0: memref<2x32xf32, #tpu.memory_space<vmem>>, %arg1: memref<2x32xf32, #tpu.memory_space<vmem>>, %arg2: memref<2x8x32xf32, #tpu.memory_space<vmem>>, %arg3: memref<3x2x32xf32, #tpu.memory_space<vmem>>, %arg4: memref<2x2x32xf32, #tpu.memory_space<vmem>>, %arg5: memref<2x8xf32, #tpu.memory_space<vmem>>, %arg6: memref<760x128xf32, #tpu.memory_space<vmem>>, %arg7: memref<80x544xf32, #tpu.memory_space<vmem>>, %arg8: memref<2x256xf32, #tpu.memory_space<vmem>>) attributes {dimension_semantics = [], scalar_prefetch = 0 : i64, scratch_operands = 0 : i64, tpu.core_type = #tpu.core_type<tc>} {
    %c0 = arith.constant 0 : index
    %c0_0 = arith.constant 0 : index
    %c0_1 = arith.constant 0 : index
    %0 = vector.load %arg3[%c0, %c0_0, %c0_1] : memref<3x2x32xf32, #tpu.memory_space<vmem>>, vector<1x2x32xf32>
    %1 = vector.shape_cast %0 : vector<1x2x32xf32> to vector<2x32xf32>
    %c1 = arith.constant 1 : index
    %c0_2 = arith.constant 0 : index
    %c0_3 = arith.constant 0 : index
    %2 = vector.load %arg3[%c1, %c0_2, %c0_3] : memref<3x2x32xf32, #tpu.memory_space<vmem>>, vector<1x2x32xf32>
    %3 = vector.shape_cast %2 : vector<1x2x32xf32> to vector<2x32xf32>
    %c2 = arith.constant 2 : index
    %c0_4 = arith.constant 0 : index
    %c0_5 = arith.constant 0 : index
    %4 = vector.load %arg3[%c2, %c0_4, %c0_5] : memref<3x2x32xf32, #tpu.memory_space<vmem>>, vector<1x2x32xf32>
    %5 = vector.shape_cast %4 : vector<1x2x32xf32> to vector<2x32xf32>
    %c0_6 = arith.constant 0 : index
    %c0_7 = arith.constant 0 : index
    %c0_8 = arith.constant 0 : index
    %6 = vector.load %arg4[%c0_6, %c0_7, %c0_8] : memref<2x2x32xf32, #tpu.memory_space<vmem>>, vector<1x2x32xf32>
    %7 = vector.shape_cast %6 : vector<1x2x32xf32> to vector<2x32xf32>
    %c1_9 = arith.constant 1 : index
    %c0_10 = arith.constant 0 : index
    %c0_11 = arith.constant 0 : index
    %8 = vector.load %arg4[%c1_9, %c0_10, %c0_11] : memref<2x2x32xf32, #tpu.memory_space<vmem>>, vector<1x2x32xf32>
    %9 = vector.shape_cast %8 : vector<1x2x32xf32> to vector<2x32xf32>
    %c0_12 = arith.constant 0 : index
    %c0_13 = arith.constant 0 : index
    %10 = vector.load %arg0[%c0_12, %c0_13] : memref<2x32xf32, #tpu.memory_space<vmem>>, vector<2x32xf32>
    %c0_14 = arith.constant 0 : index
    %c0_15 = arith.constant 0 : index
    %c0_16 = arith.constant 0 : index
    %11 = vector.load %arg2[%c0_14, %c0_15, %c0_16] : memref<2x8x32xf32, #tpu.memory_space<vmem>>, vector<2x8x32xf32>
    %c0_17 = arith.constant 0 : index
    %c0_18 = arith.constant 0 : index
    %12 = vector.load %arg5[%c0_17, %c0_18] : memref<2x8xf32, #tpu.memory_space<vmem>>, vector<2x8xf32>
    %13 = vector.shape_cast %12 : vector<2x8xf32> to vector<2x1x8xf32>
    %c0_19 = arith.constant 0 : index
    %c0_20 = arith.constant 0 : index
    %14 = vector.load %arg1[%c0_19, %c0_20] : memref<2x32xf32, #tpu.memory_space<vmem>>, vector<2x32xf32>
    %15 = arith.addf %14, %3 : vector<2x32xf32>
    %16 = arith.addf %15, %5 : vector<2x32xf32>
    %cst = arith.constant 0.333333343 : f32
    %17 = vector.broadcast %cst : f32 to vector<2x32xf32>
    %18 = arith.mulf %16, %17 : vector<2x32xf32>
    %19 = tpu.concatenate %18, %10, %1 in 1 : vector<2x32xf32>, vector<2x32xf32>, vector<2x32xf32> -> vector<2x96xf32>
    %c0_21 = arith.constant 0 : index
    %c0_22 = arith.constant 0 : index
    %20 = vector.load %arg6[%c0_21, %c0_22] : memref<760x128xf32, #tpu.memory_space<vmem>>, vector<96x128xf32>
    %c96 = arith.constant 96 : index
    %c0_23 = arith.constant 0 : index
    %21 = vector.load %arg6[%c96, %c0_23] : memref<760x128xf32, #tpu.memory_space<vmem>>, vector<1x128xf32>
    %cst_24 = arith.constant dense<0.000000e+00> : vector<2x128xf32>
    %22 = tpu.matmul %19, %20, %cst_24 {dimension_numbers = #tpu.dot_dimension_numbers<[1], [0], [0], [1], [0, 0, 1, 1], [], []>} : vector<2x96xf32>, vector<96x128xf32>, vector<2x128xf32> -> vector<2x128xf32>
    %23 = vector.broadcast %21 : vector<1x128xf32> to vector<2x128xf32>
    %24 = arith.addf %22, %23 : vector<2x128xf32>
    %25 = arith.negf %24 : vector<2x128xf32>
    %26 = math.exp %25 : vector<2x128xf32>
    %cst_25 = arith.constant 1.000000e+00 : f32
    %27 = vector.broadcast %cst_25 : f32 to vector<2x128xf32>
    %28 = arith.addf %27, %26 : vector<2x128xf32>
    %29 = arith.divf %27, %28 : vector<2x128xf32>
    %30 = math.tanh %24 : vector<2x128xf32>
    %31 = vector.extract_strided_slice %29 {offsets = [0, 0], sizes = [2, 32], strides = [1, 1]} : vector<2x128xf32> to vector<2x32xf32>
    %32 = vector.extract_strided_slice %29 {offsets = [0, 32], sizes = [2, 32], strides = [1, 1]} : vector<2x128xf32> to vector<2x32xf32>
    %33 = vector.extract_strided_slice %30 {offsets = [0, 64], sizes = [2, 32], strides = [1, 1]} : vector<2x128xf32> to vector<2x32xf32>
    %34 = vector.extract_strided_slice %29 {offsets = [0, 96], sizes = [2, 32], strides = [1, 1]} : vector<2x128xf32> to vector<2x32xf32>
    %35 = arith.mulf %32, %7 : vector<2x32xf32>
    %36 = arith.mulf %31, %33 : vector<2x32xf32>
    %37 = arith.addf %35, %36 : vector<2x32xf32>
    %38 = math.tanh %37 : vector<2x32xf32>
    %39 = arith.mulf %34, %38 : vector<2x32xf32>
    %c208 = arith.constant 208 : index
    %c0_26 = arith.constant 0 : index
    %40 = vector.load %arg6[%c208, %c0_26] : memref<760x128xf32, #tpu.memory_space<vmem>>, vector<32x128xf32>
    %cst_27 = arith.constant dense<0.000000e+00> : vector<2x128xf32>
    %41 = tpu.matmul %39, %40, %cst_27 {dimension_numbers = #tpu.dot_dimension_numbers<[1], [0], [0], [1], [0, 0, 1, 1], [], []>} : vector<2x32xf32>, vector<32x128xf32>, vector<2x128xf32> -> vector<2x128xf32>
    %c368 = arith.constant 368 : index
    %c0_28 = arith.constant 0 : index
    %42 = vector.load %arg6[%c368, %c0_28] : memref<760x128xf32, #tpu.memory_space<vmem>>, vector<1x128xf32>
    %43 = vector.broadcast %42 : vector<1x128xf32> to vector<2x128xf32>
    %44 = arith.addf %41, %43 : vector<2x128xf32>
    %cst_29 = arith.constant dense<0xFF800000> : vector<2xf32>
    %45 = vector.multi_reduction <maximumf>, %44, %cst_29 [1] : vector<2x128xf32> to vector<2xf32>
    %46 = vector.shape_cast %45 : vector<2xf32> to vector<2x1xf32>
    %47 = vector.broadcast %46 : vector<2x1xf32> to vector<2x128xf32>
    %48 = arith.subf %44, %47 : vector<2x128xf32>
    %49 = math.exp %48 : vector<2x128xf32>
    %cst_30 = arith.constant dense<0.000000e+00> : vector<2xf32>
    %50 = vector.multi_reduction <add>, %49, %cst_30 [1] : vector<2x128xf32> to vector<2xf32>
    %51 = vector.shape_cast %50 : vector<2xf32> to vector<2x1xf32>
    %52 = vector.broadcast %51 : vector<2x1xf32> to vector<2x128xf32>
    %53 = arith.divf %49, %52 : vector<2x128xf32>
    %c240 = arith.constant 240 : index
    %c0_31 = arith.constant 0 : index
    %54 = vector.load %arg6[%c240, %c0_31] : memref<760x128xf32, #tpu.memory_space<vmem>>, vector<128x32xf32>
    %cst_32 = arith.constant dense<0.000000e+00> : vector<2x32xf32>
    %55 = tpu.matmul %53, %54, %cst_32 {dimension_numbers = #tpu.dot_dimension_numbers<[1], [0], [0], [1], [0, 0, 1, 1], [], []>} : vector<2x128xf32>, vector<128x32xf32>, vector<2x32xf32> -> vector<2x32xf32>
    %cst_33 = arith.constant 0.000000e+00 : f32
    %56 = vector.broadcast %cst_33 : f32 to vector<2x32xf32>
    %57 = arith.maximumf %55, %56 : vector<2x32xf32>
    %58 = arith.addf %57, %39 : vector<2x32xf32>
    %59 = vector.shape_cast %11 : vector<2x8x32xf32> to vector<16x32xf32>
    %c0_34 = arith.constant 0 : index
    %c0_35 = arith.constant 0 : index
    %60 = vector.load %arg7[%c0_34, %c0_35] : memref<80x544xf32, #tpu.memory_space<vmem>>, vector<32x544xf32>
    %cst_36 = arith.constant dense<0.000000e+00> : vector<16x544xf32>
    %61 = tpu.matmul %59, %60, %cst_36 {dimension_numbers = #tpu.dot_dimension_numbers<[1], [0], [0], [1], [0, 0, 1, 1], [], []>} : vector<16x32xf32>, vector<32x544xf32>, vector<16x544xf32> -> vector<16x544xf32>
    %c32 = arith.constant 32 : index
    %c0_37 = arith.constant 0 : index
    %62 = vector.load %arg7[%c32, %c0_37] : memref<80x544xf32, #tpu.memory_space<vmem>>, vector<1x544xf32>
    %63 = vector.broadcast %62 : vector<1x544xf32> to vector<16x544xf32>
    %64 = arith.addf %61, %63 : vector<16x544xf32>
    %65 = vector.extract_strided_slice %64 {offsets = [0, 0], sizes = [16, 256], strides = [1, 1]} : vector<16x544xf32> to vector<16x256xf32>
    %66 = vector.extract_strided_slice %64 {offsets = [0, 256], sizes = [16, 256], strides = [1, 1]} : vector<16x544xf32> to vector<16x256xf32>
    %67 = vector.extract_strided_slice %64 {offsets = [0, 512], sizes = [16, 32], strides = [1, 1]} : vector<16x544xf32> to vector<16x32xf32>
    %68 = vector.shape_cast %67 : vector<16x32xf32> to vector<2x8x32xf32>
    %c40 = arith.constant 40 : index
    %c0_38 = arith.constant 0 : index
    %69 = vector.load %arg7[%c40, %c0_38] : memref<80x544xf32, #tpu.memory_space<vmem>>, vector<32x288xf32>
    %cst_39 = arith.constant dense<0.000000e+00> : vector<2x288xf32>
    %70 = tpu.matmul %58, %69, %cst_39 {dimension_numbers = #tpu.dot_dimension_numbers<[1], [0], [0], [1], [0, 0, 1, 1], [], []>} : vector<2x32xf32>, vector<32x288xf32>, vector<2x288xf32> -> vector<2x288xf32>
    %c72 = arith.constant 72 : index
    %c0_40 = arith.constant 0 : index
    %71 = vector.load %arg7[%c72, %c0_40] : memref<80x544xf32, #tpu.memory_space<vmem>>, vector<1x288xf32>
    %72 = vector.broadcast %71 : vector<1x288xf32> to vector<2x288xf32>
    %73 = arith.addf %70, %72 : vector<2x288xf32>
    %74 = vector.extract_strided_slice %73 {offsets = [0, 0], sizes = [2, 256], strides = [1, 1]} : vector<2x288xf32> to vector<2x256xf32>
    %75 = vector.extract_strided_slice %73 {offsets = [0, 256], sizes = [2, 32], strides = [1, 1]} : vector<2x288xf32> to vector<2x32xf32>
    %76 = vector.shape_cast %75 : vector<2x32xf32> to vector<2x1x32xf32>
    %77 = vector.broadcast %76 : vector<2x1x32xf32> to vector<2x8x32xf32>
    %78 = arith.addf %68, %77 : vector<2x8x32xf32>
    %79 = math.tanh %78 : vector<2x8x32xf32>
    %c376 = arith.constant 376 : index
    %c0_41 = arith.constant 0 : index
    %80 = vector.load %arg6[%c376, %c0_41] : memref<760x128xf32, #tpu.memory_space<vmem>>, vector<1x32xf32>
    %81 = vector.shape_cast %80 : vector<1x32xf32> to vector<1x1x32xf32>
    %82 = vector.shape_cast %81 : vector<1x1x32xf32> to vector<1x1x32xf32>
    %83 = vector.broadcast %82 : vector<1x1x32xf32> to vector<2x1x32xf32>
    "tpu.trace_start"() <{level = 10 : i32, message = "bqd,bkd->bqk"}> : () -> ()
    %cst_42 = arith.constant dense<0.000000e+00> : vector<2x1x8xf32>
    %84 = tpu.matmul %83, %79, %cst_42 {dimension_numbers = #tpu.dot_dimension_numbers<[2], [2], [1], [1], [0, 0, 0, 1, 1, 1], [0], [0]>} : vector<2x1x32xf32>, vector<2x8x32xf32>, vector<2x1x8xf32> -> vector<2x1x8xf32>
    "tpu.trace_stop"() : () -> ()
    %cst_43 = arith.constant 1.000000e+00 : f32
    %85 = vector.broadcast %cst_43 : f32 to vector<2x1x8xf32>
    %86 = arith.subf %85, %13 : vector<2x1x8xf32>
    %cst_44 = arith.constant -1.000000e+09 : f32
    %87 = vector.broadcast %cst_44 : f32 to vector<2x1x8xf32>
    %88 = arith.mulf %86, %87 : vector<2x1x8xf32>
    %89 = arith.addf %84, %88 : vector<2x1x8xf32>
    %cst_45 = arith.constant dense<0xFF800000> : vector<2x1xf32>
    %90 = vector.multi_reduction <maximumf>, %89, %cst_45 [2] : vector<2x1x8xf32> to vector<2x1xf32>
    %91 = vector.shape_cast %90 : vector<2x1xf32> to vector<2x1x1xf32>
    %92 = vector.broadcast %91 : vector<2x1x1xf32> to vector<2x1x8xf32>
    %93 = arith.subf %89, %92 : vector<2x1x8xf32>
    %94 = math.exp %93 : vector<2x1x8xf32>
    %cst_46 = arith.constant dense<0.000000e+00> : vector<2x1xf32>
    %95 = vector.multi_reduction <add>, %94, %cst_46 [2] : vector<2x1x8xf32> to vector<2x1xf32>
    %96 = vector.shape_cast %95 : vector<2x1xf32> to vector<2x1x1xf32>
    %97 = vector.broadcast %96 : vector<2x1x1xf32> to vector<2x1x8xf32>
    %98 = arith.divf %94, %97 : vector<2x1x8xf32>
    "tpu.trace_start"() <{level = 10 : i32, message = "bqk,bkd->bqd"}> : () -> ()
    %cst_47 = arith.constant dense<0.000000e+00> : vector<2x1x32xf32>
    %99 = tpu.matmul %98, %11, %cst_47 {dimension_numbers = #tpu.dot_dimension_numbers<[2], [1], [1], [2], [0, 0, 0, 1, 1, 2], [0], [0]>} : vector<2x1x8xf32>, vector<2x8x32xf32>, vector<2x1x32xf32> -> vector<2x1x32xf32>
    "tpu.trace_stop"() : () -> ()
    %100 = vector.shape_cast %99 : vector<2x1x32xf32> to vector<2x32xf32>
    %101 = tpu.concatenate %58, %100, %3 in 1 : vector<2x32xf32>, vector<2x32xf32>, vector<2x32xf32> -> vector<2x96xf32>
    %c104 = arith.constant 104 : index
    %c0_48 = arith.constant 0 : index
    %102 = vector.load %arg6[%c104, %c0_48] : memref<760x128xf32, #tpu.memory_space<vmem>>, vector<96x128xf32>
    %c200 = arith.constant 200 : index
    %c0_49 = arith.constant 0 : index
    %103 = vector.load %arg6[%c200, %c0_49] : memref<760x128xf32, #tpu.memory_space<vmem>>, vector<1x128xf32>
    %cst_50 = arith.constant dense<0.000000e+00> : vector<2x128xf32>
    %104 = tpu.matmul %101, %102, %cst_50 {dimension_numbers = #tpu.dot_dimension_numbers<[1], [0], [0], [1], [0, 0, 1, 1], [], []>} : vector<2x96xf32>, vector<96x128xf32>, vector<2x128xf32> -> vector<2x128xf32>
    %105 = vector.broadcast %103 : vector<1x128xf32> to vector<2x128xf32>
    %106 = arith.addf %104, %105 : vector<2x128xf32>
    %107 = arith.negf %106 : vector<2x128xf32>
    %108 = math.exp %107 : vector<2x128xf32>
    %cst_51 = arith.constant 1.000000e+00 : f32
    %109 = vector.broadcast %cst_51 : f32 to vector<2x128xf32>
    %110 = arith.addf %109, %108 : vector<2x128xf32>
    %111 = arith.divf %109, %110 : vector<2x128xf32>
    %112 = math.tanh %106 : vector<2x128xf32>
    %113 = vector.extract_strided_slice %111 {offsets = [0, 0], sizes = [2, 32], strides = [1, 1]} : vector<2x128xf32> to vector<2x32xf32>
    %114 = vector.extract_strided_slice %111 {offsets = [0, 32], sizes = [2, 32], strides = [1, 1]} : vector<2x128xf32> to vector<2x32xf32>
    %115 = vector.extract_strided_slice %112 {offsets = [0, 64], sizes = [2, 32], strides = [1, 1]} : vector<2x128xf32> to vector<2x32xf32>
    %116 = vector.extract_strided_slice %111 {offsets = [0, 96], sizes = [2, 32], strides = [1, 1]} : vector<2x128xf32> to vector<2x32xf32>
    %117 = arith.mulf %114, %9 : vector<2x32xf32>
    %118 = arith.mulf %113, %115 : vector<2x32xf32>
    %119 = arith.addf %117, %118 : vector<2x32xf32>
    %120 = math.tanh %119 : vector<2x32xf32>
    %121 = arith.mulf %116, %120 : vector<2x32xf32>
    %122 = vector.extract_strided_slice %65 {offsets = [0, 0], sizes = [16, 64], strides = [1, 1]} : vector<16x256xf32> to vector<16x64xf32>
    %123 = vector.shape_cast %122 : vector<16x64xf32> to vector<2x8x64xf32>
    %124 = vector.extract_strided_slice %65 {offsets = [0, 64], sizes = [16, 64], strides = [1, 1]} : vector<16x256xf32> to vector<16x64xf32>
    %125 = vector.shape_cast %124 : vector<16x64xf32> to vector<2x8x64xf32>
    %126 = vector.extract_strided_slice %65 {offsets = [0, 128], sizes = [16, 64], strides = [1, 1]} : vector<16x256xf32> to vector<16x64xf32>
    %127 = vector.shape_cast %126 : vector<16x64xf32> to vector<2x8x64xf32>
    %128 = vector.extract_strided_slice %65 {offsets = [0, 192], sizes = [16, 64], strides = [1, 1]} : vector<16x256xf32> to vector<16x64xf32>
    %129 = vector.shape_cast %128 : vector<16x64xf32> to vector<2x8x64xf32>
    %130 = tpu.concatenate %123, %125, %127, %129 in 0 : vector<2x8x64xf32>, vector<2x8x64xf32>, vector<2x8x64xf32>, vector<2x8x64xf32> -> vector<8x8x64xf32>
    %131 = vector.extract_strided_slice %66 {offsets = [0, 0], sizes = [16, 64], strides = [1, 1]} : vector<16x256xf32> to vector<16x64xf32>
    %132 = vector.shape_cast %131 : vector<16x64xf32> to vector<2x8x64xf32>
    %133 = vector.extract_strided_slice %66 {offsets = [0, 64], sizes = [16, 64], strides = [1, 1]} : vector<16x256xf32> to vector<16x64xf32>
    %134 = vector.shape_cast %133 : vector<16x64xf32> to vector<2x8x64xf32>
    %135 = vector.extract_strided_slice %66 {offsets = [0, 128], sizes = [16, 64], strides = [1, 1]} : vector<16x256xf32> to vector<16x64xf32>
    %136 = vector.shape_cast %135 : vector<16x64xf32> to vector<2x8x64xf32>
    %137 = vector.extract_strided_slice %66 {offsets = [0, 192], sizes = [16, 64], strides = [1, 1]} : vector<16x256xf32> to vector<16x64xf32>
    %138 = vector.shape_cast %137 : vector<16x64xf32> to vector<2x8x64xf32>
    %139 = tpu.concatenate %132, %134, %136, %138 in 0 : vector<2x8x64xf32>, vector<2x8x64xf32>, vector<2x8x64xf32>, vector<2x8x64xf32> -> vector<8x8x64xf32>
    %140 = vector.extract_strided_slice %74 {offsets = [0, 0], sizes = [2, 64], strides = [1, 1]} : vector<2x256xf32> to vector<2x64xf32>
    %141 = vector.extract_strided_slice %74 {offsets = [0, 64], sizes = [2, 64], strides = [1, 1]} : vector<2x256xf32> to vector<2x64xf32>
    %142 = vector.extract_strided_slice %74 {offsets = [0, 128], sizes = [2, 64], strides = [1, 1]} : vector<2x256xf32> to vector<2x64xf32>
    %143 = vector.extract_strided_slice %74 {offsets = [0, 192], sizes = [2, 64], strides = [1, 1]} : vector<2x256xf32> to vector<2x64xf32>
    %144 = tpu.concatenate %140, %141, %142, %143 in 0 : vector<2x64xf32>, vector<2x64xf32>, vector<2x64xf32>, vector<2x64xf32> -> vector<8x64xf32>
    %145 = vector.shape_cast %144 : vector<8x64xf32> to vector<8x1x64xf32>
    %146 = tpu.concatenate %13, %13, %13, %13 in 0 : vector<2x1x8xf32>, vector<2x1x8xf32>, vector<2x1x8xf32>, vector<2x1x8xf32> -> vector<8x1x8xf32>
    "tpu.trace_start"() <{level = 10 : i32, message = "bqd,bkd->bqk"}> : () -> ()
    %cst_52 = arith.constant dense<0.000000e+00> : vector<8x1x8xf32>
    %147 = tpu.matmul %145, %130, %cst_52 {dimension_numbers = #tpu.dot_dimension_numbers<[2], [2], [1], [1], [0, 0, 0, 1, 1, 1], [0], [0]>} : vector<8x1x64xf32>, vector<8x8x64xf32>, vector<8x1x8xf32> -> vector<8x1x8xf32>
    "tpu.trace_stop"() : () -> ()
    %cst_53 = arith.constant 1.250000e-01 : f32
    %148 = vector.broadcast %cst_53 : f32 to vector<8x1x8xf32>
    %149 = arith.mulf %147, %148 : vector<8x1x8xf32>
    %cst_54 = arith.constant 1.000000e+00 : f32
    %150 = vector.broadcast %cst_54 : f32 to vector<8x1x8xf32>
    %151 = arith.subf %150, %146 : vector<8x1x8xf32>
    %cst_55 = arith.constant -1.000000e+09 : f32
    %152 = vector.broadcast %cst_55 : f32 to vector<8x1x8xf32>
    %153 = arith.mulf %151, %152 : vector<8x1x8xf32>
    %154 = arith.addf %149, %153 : vector<8x1x8xf32>
    %cst_56 = arith.constant dense<0xFF800000> : vector<8x1xf32>
    %155 = vector.multi_reduction <maximumf>, %154, %cst_56 [2] : vector<8x1x8xf32> to vector<8x1xf32>
    %156 = vector.shape_cast %155 : vector<8x1xf32> to vector<8x1x1xf32>
    %157 = vector.broadcast %156 : vector<8x1x1xf32> to vector<8x1x8xf32>
    %158 = arith.subf %154, %157 : vector<8x1x8xf32>
    %159 = math.exp %158 : vector<8x1x8xf32>
    %cst_57 = arith.constant dense<0.000000e+00> : vector<8x1xf32>
    %160 = vector.multi_reduction <add>, %159, %cst_57 [2] : vector<8x1x8xf32> to vector<8x1xf32>
    %161 = vector.shape_cast %160 : vector<8x1xf32> to vector<8x1x1xf32>
    %162 = vector.broadcast %161 : vector<8x1x1xf32> to vector<8x1x8xf32>
    %163 = arith.divf %159, %162 : vector<8x1x8xf32>
    "tpu.trace_start"() <{level = 10 : i32, message = "bqk,bkd->bqd"}> : () -> ()
    %cst_58 = arith.constant dense<0.000000e+00> : vector<8x1x64xf32>
    %164 = tpu.matmul %163, %139, %cst_58 {dimension_numbers = #tpu.dot_dimension_numbers<[2], [1], [1], [2], [0, 0, 0, 1, 1, 2], [0], [0]>} : vector<8x1x8xf32>, vector<8x8x64xf32>, vector<8x1x64xf32> -> vector<8x1x64xf32>
    "tpu.trace_stop"() : () -> ()
    %165 = vector.shape_cast %164 : vector<8x1x64xf32> to vector<8x64xf32>
    %166 = vector.extract_strided_slice %165 {offsets = [0, 0], sizes = [2, 64], strides = [1, 1]} : vector<8x64xf32> to vector<2x64xf32>
    %167 = vector.extract_strided_slice %165 {offsets = [2, 0], sizes = [2, 64], strides = [1, 1]} : vector<8x64xf32> to vector<2x64xf32>
    %168 = vector.extract_strided_slice %165 {offsets = [4, 0], sizes = [2, 64], strides = [1, 1]} : vector<8x64xf32> to vector<2x64xf32>
    %169 = vector.extract_strided_slice %165 {offsets = [6, 0], sizes = [2, 64], strides = [1, 1]} : vector<8x64xf32> to vector<2x64xf32>
    %170 = tpu.concatenate %166, %167, %168, %169 in 1 : vector<2x64xf32>, vector<2x64xf32>, vector<2x64xf32>, vector<2x64xf32> -> vector<2x256xf32>
    %c384 = arith.constant 384 : index
    %c0_59 = arith.constant 0 : index
    %171 = vector.load %arg6[%c384, %c0_59] : memref<760x128xf32, #tpu.memory_space<vmem>>, vector<256x32xf32>
    %cst_60 = arith.constant dense<0.000000e+00> : vector<2x32xf32>
    %172 = tpu.matmul %170, %171, %cst_60 {dimension_numbers = #tpu.dot_dimension_numbers<[1], [0], [0], [1], [0, 0, 1, 1], [], []>} : vector<2x256xf32>, vector<256x32xf32>, vector<2x32xf32> -> vector<2x32xf32>
    %c640 = arith.constant 640 : index
    %c0_61 = arith.constant 0 : index
    %173 = vector.load %arg6[%c640, %c0_61] : memref<760x128xf32, #tpu.memory_space<vmem>>, vector<1x32xf32>
    %174 = vector.broadcast %173 : vector<1x32xf32> to vector<2x32xf32>
    %175 = arith.addf %172, %174 : vector<2x32xf32>
    %176 = arith.addf %175, %58 : vector<2x32xf32>
    %177 = tpu.concatenate %176, %100 in 1 : vector<2x32xf32>, vector<2x32xf32> -> vector<2x64xf32>
    %c648 = arith.constant 648 : index
    %c0_62 = arith.constant 0 : index
    %178 = vector.load %arg6[%c648, %c0_62] : memref<760x128xf32, #tpu.memory_space<vmem>>, vector<64x64xf32>
    %cst_63 = arith.constant dense<0.000000e+00> : vector<2x64xf32>
    %179 = tpu.matmul %177, %178, %cst_63 {dimension_numbers = #tpu.dot_dimension_numbers<[1], [0], [0], [1], [0, 0, 1, 1], [], []>} : vector<2x64xf32>, vector<64x64xf32>, vector<2x64xf32> -> vector<2x64xf32>
    %c712 = arith.constant 712 : index
    %c0_64 = arith.constant 0 : index
    %180 = vector.load %arg6[%c712, %c0_64] : memref<760x128xf32, #tpu.memory_space<vmem>>, vector<1x64xf32>
    %181 = vector.broadcast %180 : vector<1x64xf32> to vector<2x64xf32>
    %182 = arith.addf %179, %181 : vector<2x64xf32>
    %cst_65 = arith.constant 0.000000e+00 : f32
    %183 = vector.broadcast %cst_65 : f32 to vector<2x64xf32>
    %184 = arith.maximumf %182, %183 : vector<2x64xf32>
    %c720 = arith.constant 720 : index
    %c0_66 = arith.constant 0 : index
    %185 = vector.load %arg6[%c720, %c0_66] : memref<760x128xf32, #tpu.memory_space<vmem>>, vector<32x64xf32>
    %cst_67 = arith.constant dense<0.000000e+00> : vector<2x64xf32>
    %186 = tpu.matmul %75, %185, %cst_67 {dimension_numbers = #tpu.dot_dimension_numbers<[1], [0], [0], [1], [0, 0, 1, 1], [], []>} : vector<2x32xf32>, vector<32x64xf32>, vector<2x64xf32> -> vector<2x64xf32>
    %c752 = arith.constant 752 : index
    %c0_68 = arith.constant 0 : index
    %187 = vector.load %arg6[%c752, %c0_68] : memref<760x128xf32, #tpu.memory_space<vmem>>, vector<1x64xf32>
    %188 = vector.broadcast %187 : vector<1x64xf32> to vector<2x64xf32>
    %189 = arith.addf %186, %188 : vector<2x64xf32>
    %cst_69 = arith.constant 0.000000e+00 : f32
    %190 = vector.broadcast %cst_69 : f32 to vector<2x64xf32>
    %191 = arith.maximumf %189, %190 : vector<2x64xf32>
    %192 = arith.addf %184, %191 : vector<2x64xf32>
    %193 = vector.extract_strided_slice %192 {offsets = [0, 0], sizes = [2, 32], strides = [1, 1]} : vector<2x64xf32> to vector<2x32xf32>
    %194 = vector.extract_strided_slice %192 {offsets = [0, 32], sizes = [2, 32], strides = [1, 1]} : vector<2x64xf32> to vector<2x32xf32>
    %195 = arith.negf %194 : vector<2x32xf32>
    %196 = math.exp %195 : vector<2x32xf32>
    %cst_70 = arith.constant 1.000000e+00 : f32
    %197 = vector.broadcast %cst_70 : f32 to vector<2x32xf32>
    %198 = arith.addf %197, %196 : vector<2x32xf32>
    %199 = arith.divf %197, %198 : vector<2x32xf32>
    %200 = arith.mulf %199, %193 : vector<2x32xf32>
    %cst_71 = arith.constant 0.000000e+00 : f32
    %201 = vector.broadcast %cst_71 : f32 to vector<2x96xf32>
    %202 = tpu.concatenate %39, %121, %200, %37, %119, %201 in 1 : vector<2x32xf32>, vector<2x32xf32>, vector<2x32xf32>, vector<2x32xf32>, vector<2x32xf32>, vector<2x96xf32> -> vector<2x256xf32>
    %c0_72 = arith.constant 0 : index
    %c0_73 = arith.constant 0 : index
    %203 = vector.load %arg8[%c0_72, %c0_73] : memref<2x256xf32, #tpu.memory_space<vmem>>, vector<2x256xf32>
    tpu.vector_store %arg8[%c0_72, %c0_73], %202 {strides = array<i32>} : memref<2x256xf32, #tpu.memory_space<vmem>>, vector<2x256xf32>,
    return
  }
}

</mosaic_0001>

<bundles_post_ra>
// kernel: parallel_decoder_layer.1
= control target key start
LH: loop header
LB: loop body
LE: loop exit
PB: predicated region body
PF: predicated region fallthrough
CT: control target
= control target key end

     0   :  { %13 = vsyncpa [#allocation3], 0  ;;  %s2425_s0 = inlined_call_operand.hbm [shape: f32[2,32], index: 0, kind: input, shape index: {}]   ;;  %s2426_s1 = inlined_call_operand.hbm [shape: f32[2,32], index: 1, kind: input, shape index: {}]   ;;  %s2427_s2 = inlined_call_operand.hbm [shape: f32[2,8,32], index: 2, kind: input, shape index: {}]   ;;  %s2428_s3 = inlined_call_operand.hbm [shape: f32[3,2,32], index: 3, kind: input, shape index: {}]   ;;  %s2429_s4 = inlined_call_operand.hbm [shape: f32[2,2,32], index: 4, kind: input, shape index: {}]   ;;  %s2430_s5 = inlined_call_operand.vmem [shape: f32[2,8], index: 5, kind: input, shape index: {}]   ;;  %s2431_s6 = inlined_call_operand.hbm [shape: f32[760,128], index: 6, kind: input, shape index: {}]   ;;  %s2432_s7 = inlined_call_operand.hbm [shape: f32[80,544], index: 7, kind: input, shape index: {}]   ;;  %s2433_s8 = inlined_call_operand.vmem [shape: f32[2,256], index: 8, kind: output, shape index: {}]  }
   0x1   :  { %14 = vsyncpa [#allocation5], 0 }
   0x2   :  { %15 = vsyncpa [#allocation8], 0  ;;  %s33_s29 = sshll.u32 %s2426_s1, 4  ;;  %s34_s29 = int_to_ptr.hbm [resolvable:$true] %s33_s29 }
   0x3   :  { %16 = vsyncpa [#allocation11], 0  ;;  %s2023_s30 = smov [#allocation4]   ;;  %s56_s12 = sshll.u32 %s2428_s3, 4  ;;  %s57_s12 = int_to_ptr.hbm [resolvable:$true] %s56_s12 }
   0x4   :  { %s35_s9 = sshll.u32 %s2023_s30, 4  ;;  %s2024_s13 = smov [#allocation7]   ;;  %s36_s9 = int_to_ptr.vmem [resolvable:$true] %s35_s9 }
   0x5   :  { %38 = dma.hbm_to_vmem [thread:$0]  %s34_s29, 32, %s36_s9, [#allocation5]  }
   0x6   :  { %s58_s14 = sshll.u32 %s2024_s13, 4  ;;  %s2025_s15 = smov 32   ;;  %s59_s14 = int_to_ptr.vmem [resolvable:$true] %s58_s14 }
   0x7   :  { %s2026_s16 = smov 2   ;;  %s84_s18 = sshll.u32 %s2431_s6, 4  ;;  %s85_s18 = int_to_ptr.hbm [resolvable:$true] %s84_s18 }
   0x8   :  { %64 = dma.hbm_to_vmem [thread:$0]  %s57_s12, 96, %s59_s14, [#allocation8], %s2025_s15, %s2025_s15, %s2026_s16  }
   0x9   :  { %s2027_s19 = smov [#allocation10]   ;;  %s22_s22 = sshll.u32 %s2425_s0, 4  ;;  %s23_s22 = int_to_ptr.hbm [resolvable:$true] %s22_s22 }
   0xa   :  { %s86_s20 = sshll.u32 %s2027_s19, 4  ;;  %s2028_s23 = smov 128   ;;  %s87_s20 = int_to_ptr.vmem [resolvable:$true] %s86_s20 }
   0xb   :  { %s2029_s24 = smov 8   ;;  %s2030_s25 = smov [#allocation2]  }
   0xc   :  { %92 = dma.hbm_to_vmem [thread:$0]  %s85_s18, 12160, %s87_s20, [#allocation11], %s2028_s23, %s2028_s23, %s2029_s24  }
   0xd   :  { %s24_s26 = sshll.u32 %s2030_s25, 4  ;;  %s43_s29 = sshll.u32 %s2427_s2, 4  ;;  %s25_s26 = int_to_ptr.vmem [resolvable:$true] %s24_s26  ;;  %s44_s29 = int_to_ptr.hbm [resolvable:$true] %s43_s29 }
   0xe   :  { %27 = dma.hbm_to_vmem [thread:$0]  %s23_s22, 32, %s25_s26, [#allocation3]  }
   0xf   :  { %s69_s9 = sshll.u32 %s2429_s4, 4  ;;  %s2031_s10 = smov [#allocation6]   ;;  %s70_s9 = int_to_ptr.hbm [resolvable:$true] %s69_s9 }
  0x10   :  { %s45_s11 = sshll.u32 %s2031_s10, 4  ;;  %s2032_s0 = smov [#allocation9]   ;;  %s46_s11 = int_to_ptr.vmem [resolvable:$true] %s45_s11 }
  0x11   :  { %51 = dma.hbm_to_vmem [thread:$0]  %s44_s29, 256, %s46_s11, [#allocation5], %s2028_s23, %s2028_s23, %s2029_s24  }
  0x12   :  { %s71_s12 = sshll.u32 %s2032_s0, 4  ;;  %s97_s1 = sshll.u32 %s2432_s7, 4  ;;  %s72_s12 = int_to_ptr.vmem [resolvable:$true] %s71_s12  ;;  %s98_s1 = int_to_ptr.hbm [resolvable:$true] %s97_s1 }
  0x13   :  { %77 = dma.hbm_to_vmem [thread:$0]  %s70_s9, 64, %s72_s12, [#allocation8], %s2025_s15, %s2025_s15, %s2026_s16  }
  0x14   :  { %s2033_s2 = smov [#allocation12]   ;;  %s2034_s4 = smov 640  }
  0x15   :  { %s99_s17 = sshll.u32 %s2033_s2, 4  ;;  %s2035_s18 = smov 40   ;;  %s100_s17 = int_to_ptr.vmem [resolvable:$true] %s99_s17 }
  0x16   :  { %105 = dma.hbm_to_vmem [thread:$0]  %s98_s1, 6400, %s100_s17, [#allocation11], %s2034_s4, %s2034_s4, %s2035_s18  }
  0x17   :  { %2015 = dma.done.wait [#allocation3], 32  }
  0x18   :  { %2016 = vsyncadd [#allocation3], 4294967264 }
  0x19   :  { %2017 = dma.done.wait [#allocation5], 288  }
  0x1a   :  { %2018 = vsyncadd [#allocation5], 4294967008 }
  0x1b   :  { %2019 = dma.done.wait [#allocation8], 160  }
  0x1c   :  { %2020 = vsyncadd [#allocation8], 4294967136 }
  0x1d   :  { %2021 = dma.done.wait [#allocation11], 18560  }
  0x1e   :  { %2022 = vsyncadd [#allocation11], 4294948736  ;;  %v142_v0 = vld [vmem:[#allocation2] sm:$0x3]  ;;  %v176_v1 = vld [vmem:[#allocation10 + $0x58] sm:$0xff]  ;;  %s2036_s7 = smov 64  }
  0x1f   :  { %154 = vrot.lane.b32.xlu0 %v142_v0, %s2025_s15  ;;  %187 = vmatpush.msra.mxu0 %v176_v1  ;;  %v175_v2 = vld [vmem:[#allocation10 + $0x50] sm:$0xff]  ;;  %v174_v3 = vld [vmem:[#allocation10 + $0x48] sm:$0xff]  ;;  %v173_v4 = vld [vmem:[#allocation10 + $0x40] sm:$0xff]  ;;  %vm161_vm0 = vcmask 261120   ;;  %vm163_vm1 = vcmask 523264   ;;  %vm179_vm2 = vcmask 785408  }
  0x20   :  { %v134_v5 = vld [vmem:[#allocation7] sm:$0x3]  ;;  %v172_v6 = vld [vmem:[#allocation10 + $0x38] sm:$0xff]  ;;  %v170_v8 = vld [vmem:[#allocation10 + $0x28] sm:$0xff]  ;;  %vm275_vm7 = vcmask 1041408   ;;  %vm643_vm12 = vcmask 57344  }
  0x21   :  { %188 = vmatpush.msra.mxu0 %v175_v2  ;;  %v171_v7 = vld [vmem:[#allocation10 + $0x30] sm:$0xff]  ;;  %v169_v9 = vld [vmem:[#allocation10 + $0x20] sm:$0xff]  ;;  %v168_v10 = vld [vmem:[#allocation10 + $0x18] sm:$0xff]  ;;  %vm872_vm13 = vcmask 1043456   ;;  %vm874_vm14 = vcmask 1045504  }
  0x22   :  { %v167_v11 = vld [vmem:[#allocation10 + $0x10] sm:$0xff]  ;;  %v166_v12 = vld [vmem:[#allocation10 + $0x8] sm:$0xff]  ;;  %v165_v13 = vld [vmem:[#allocation10] sm:$0xff] }
  0x23   :  { %189 = vmatpush.msra.mxu0 %v174_v3  ;;  %v149_v14 = vld [vmem:[#allocation4] sm:$0x3]  ;;  %v2112_v15 = vld [vmem:[#allocation7 + $0x2] sm:$0x3]  ;;  %v138_v17 = vld [vmem:[#allocation7 + $0x4] sm:$0x3] }
  0x24   :  { %v150_v16 = vadd.f32 %v149_v14, %v2112_v15  ;;  %v1773_v24 = vld [vmem:[#allocation10 + $0x60] ss:$0 sm:$0xff]  ;;  %v139_v28 = vld [vmem:[#allocation9] sm:$0x3]  ;;  %v247_v49 = vld [vmem:[#allocation10 + $0xe8] sm:$0xff] }
  0x25   :  { %190 = vmatpush.msra.mxu0 %v173_v4  ;;  %v246_v50 = vld [vmem:[#allocation10 + $0xe0] sm:$0xff]  ;;  %v245_v51 = vld [vmem:[#allocation10 + $0xd8] sm:$0xff]  ;;  %v244_v52 = vld [vmem:[#allocation10 + $0xd0] sm:$0xff] }
  0x26   :  { %v151_v19 = vadd.f32 %v150_v16, %v138_v17  ;;  %v1774_v56 = vld [vmem:[#allocation10 + $0x170] ss:$0 sm:$0xff]  ;;  %v315_v60 = vld [vmem:[#allocation10 + $0x168] sm:$0xff]  ;;  %v314_v61 = vld [vmem:[#allocation10 + $0x160] sm:$0xff] }
  0x27   :  { %158 = vrot.lane.b32.xlu0 %v134_v5, %s2036_s7  ;;  %191 = vmatpush.msra.mxu0 %v172_v6  ;;  %v313_v62 = vld [vmem:[#allocation10 + $0x158] sm:$0xff]  ;;  %v312_v63 = vld [vmem:[#allocation10 + $0x150] sm:$0xff]  ;;  %v311_v0 = vld [vmem:[#allocation10 + $0x148] sm:$0xff] }
  0x28   :  { %v152_v20 = vmul.f32 0.33333334, %v151_v19  ;;  %316 = vmatpush.msra.mxu2 %v315_v60  ;;  %v310_v1 = vld [vmem:[#allocation10 + $0x140] sm:$0xff]  ;;  %v301_v16 = vld [vmem:[#allocation10 + $0xf8] sm:$0xff]  ;;  %v300_v17 = vld [vmem:[#allocation10 + $0xf0] sm:$0xff] }
  0x29   :  { %192 = vmatpush.msra.mxu0 %v171_v7  ;;  %v309_v7 = vld [vmem:[#allocation10 + $0x138] sm:$0xff]  ;;  %v302_v14 = vld [vmem:[#allocation10 + $0x100] sm:$0xff]  ;;  %v349_v19 = vld [vmem:[#allocation12 + $0x50] sm:$0xff] }
  0x2a   :  { %317 = vmatpush.msra.mxu2 %v314_v61  ;;  %v498_v60 = vld [vmem:[#allocation12 + $0xf0] sm:$0xff]  ;;  %v499_v61 = vld [vmem:[#allocation12 + $0xf8] sm:$0xff] }
  0x2b   :  { %193 = vmatpush.msra.mxu0 %v170_v8  ;;  %v308_v8 = vld [vmem:[#allocation10 + $0x130] sm:$0xff] }
  0x2c   :  { %318 = vmatpush.msra.mxu2 %v313_v62  ;;  %v500_v62 = vld [vmem:[#allocation12 + $0x100] sm:$0xff] }
  0x2d   :  { %194 = vmatpush.msra.mxu0 %v169_v9  ;;  %v307_v9 = vld [vmem:[#allocation10 + $0x128] sm:$0xff] }
  0x2e   :  { %319 = vmatpush.msra.mxu2 %v312_v63  ;;  %v495_v63 = vld [vmem:[#allocation12 + $0xc8] sm:$0xff] }
  0x2f   :  { %195 = vmatpush.msra.mxu0 %v168_v10  ;;  %v306_v10 = vld [vmem:[#allocation10 + $0x120] sm:$0xff] }
  0x30   :  { %320 = vmatpush.msra.mxu2 %v311_v0  ;;  %v496_v0 = vld [vmem:[#allocation12 + $0xd0] sm:$0xff] }
  0x31   :  { %196 = vmatpush.msra.mxu0 %v167_v11  ;;  %v305_v11 = vld [vmem:[#allocation10 + $0x118] sm:$0xff] }
  0x32   :  { %321 = vmatpush.msra.mxu2 %v310_v1  ;;  %v497_v1 = vld [vmem:[#allocation12 + $0xd8] sm:$0xff] }
  0x33   :  { %197 = vmatpush.msra.mxu0 %v166_v12  ;;  %v304_v12 = vld [vmem:[#allocation10 + $0x110] sm:$0xff] }
  0x34   :  { %322 = vmatpush.msra.mxu2 %v309_v7 }
  0x35   :  { %198 = vmatpush.msra.mxu0 %v165_v13  ;;  %v303_v13 = vld [vmem:[#allocation10 + $0x108] sm:$0xff] }
  0x36   :  { %323 = vmatpush.msra.mxu2 %v308_v8 }
  0x37   :  { %267 = vmatpush.msrb.mxu0 %v247_v49 }
  0x38   :  { %324 = vmatpush.msra.mxu2 %v307_v9 }
  0x39   :  { %268 = vmatpush.msrb.mxu0 %v246_v50 }
  0x3a   :  { %325 = vmatpush.msra.mxu2 %v306_v10 }
  0x3b   :  { %269 = vmatpush.msrb.mxu0 %v245_v51 }
  0x3c   :  { %326 = vmatpush.msra.mxu2 %v305_v11 }
  0x3d   :  { %270 = vmatpush.msrb.mxu0 %v244_v52 }
  0x3e   :  { %327 = vmatpush.msra.mxu2 %v304_v12 }
  0x40   :  { %328 = vmatpush.msra.mxu2 %v303_v13 }
  0x42   :  { %329 = vmatpush.msra.mxu2 %v302_v14 }
  0x44   :  { %330 = vmatpush.msra.mxu2 %v301_v16 }
  0x46   :  { %331 = vmatpush.msra.mxu2 %v300_v17 }
  0x91   :  { %v155_v18 = vpop.permute.xlu0 %154 }
  0x92   :  { %v162_v21 = vsel %vm161_vm0, %v152_v20, %v155_v18  ;;  %v354_v18 = vld [vmem:[#allocation12 + $0x78] sm:$0xff]  ;;  %v344_v20 = vld [vmem:[#allocation12 + $0x28] sm:$0xff] }
  0x93   :  { %392 = vmatpush.msra.mxu3 %v354_v18 }
  0x95   :  { %393 = vmatpush.msra.mxu3 %v349_v19 }
  0x97   :  { %394 = vmatpush.msra.mxu3 %v344_v20 }
  0x99   :  { %v159_v22 = vpop.permute.xlu0 %158 }
  0x9a   :  { %v164_v23 = vsel %vm163_vm1, %v162_v21, %v159_v22  ;;  %v355_v21 = vld [vmem:[#allocation12 + $0x80] sm:$0xff]  ;;  %v350_v22 = vld [vmem:[#allocation12 + $0x58] sm:$0xff] }
  0x9b   :  { %1692 = vmatmul.msk.f32.vlgmr.msra.gmra.mxu0 %vm179_vm2, %v164_v23  ;;  %v339_v23 = vld [vmem:[#allocation12] sm:$0xff]  ;;  %415 = vmatpush.msra.mxu1 %v355_v21 }
  0x9c   :  { %395 = vmatpush.msra.mxu3 %v339_v23 }
  0x9d   :  { %416 = vmatpush.msra.mxu1 %v350_v22 }
 0x118   :  { %v200_v25 = vpop.f32.mrf.mxu0 }
 0x119   :  { %v201_v26 = vadd.f32 %v1773_v24, %v200_v25  ;;  %v2135_v24 = vld [vmem:[#allocation6] sm:$0xff] }
 0x11a   :  { %v345_v25 = vld [vmem:[#allocation12 + $0x30] sm:$0xff]  ;;  %1695 = vmatmul.msk.f32.vlgmr.msra.gmra.mxu3 %vm161_vm0, %v2135_v24 }
 0x11b   :  { %1779 = vtanh.f32 %v201_v26  ;;  %v1693_v29 = vmul.f32 -1.442695, %v201_v26  ;;  %v356_v26 = vld [vmem:[#allocation12 + $0x88] sm:$0xff]  ;;  %417 = vmatpush.msra.mxu1 %v345_v25 }
 0x11c   :  { %438 = vmatpush.msrb.mxu3 %v356_v26 }
 0x11d   :  { %1781 = vpow2.f32 %v1693_v29  ;;  %v358_v29 = vld [vmem:[#allocation12 + $0x98] sm:$0xff] }
 0x121   :  { %v1780_v27 = vpop.eup %1779 }
 0x122   :  { %229 = vrot.lane.b32.xlu1 %v1780_v27, %s2036_s7  ;;  %v340_v27 = vld [vmem:[#allocation12 + $0x8] sm:$0xff] }
 0x123   :  { %v1782_v30 = vpop.eup %1781  ;;  %418 = vmatpush.msra.mxu1 %v340_v27  ;;  %v508_v27 = vld [vmem:[#allocation12 + $0x168] ss:$8 sm:$0x7] }
 0x124   :  { %v206_v31 = vadd.f32 1.0, %v1782_v30  ;;  %v346_v30 = vld [vmem:[#allocation12 + $0x38] sm:$0xff]  ;;  %1697 = vmatmul.msk.f32.vlgmr.msra.gmra.mxu1 %vm161_vm0, %v2135_v24 }
 0x125   :  { %484 = vmatpush.msrb.mxu1 %v358_v29  ;;  %v512_v29 = vperm.slane %v508_v27, 2 }
 0x126   :  { %1783 = vrcp.f32 %v206_v31  ;;  %v218_v37 = vand.u32 2147483648, %v206_v31  ;;  %vm212_vm4 = vweird.f32 %v206_v31  ;;  %v216_v38 = vand.u32 2147483647, %v206_v31 }
 0x128   :  { %v219_v40 = vor.u32 1.1754944e-38, %v218_v37  ;;  %vm217_vm6 = vcmp.eq.f32.partialorder %v216_v38, 8.507059e+37  ;;  %v348_v37 = vld [vmem:[#allocation12 + $0x48] sm:$0xff]  ;;  %v504_v38 = vld [vmem:[#allocation12 + $0x140] sm:$0xff] }
 0x129   :  { %531 = vmatpush.msrb.mxu2 %v504_v38 }
 0x12a   :  { %224 = vrot.lane.b32.xlu1 %v139_v28, %s2025_s15  ;;  %v351_v28 = vld [vmem:[#allocation12 + $0x60] sm:$0xff] }
 0x12b   :  { %439 = vmatpush.msrb.mxu3 %v351_v28 }
 0x12c   :  { %v1784_v32 = vpop.eup %1783 }
 0x12d   :  { %v208_v33 = vmul.f32 %v1784_v32, %v206_v31  ;;  %vm213_vm3 = vweird.f32 %v1784_v32  ;;  %v353_v31 = vld [vmem:[#allocation12 + $0x70] sm:$0xff]  ;;  %440 = vmatpush.msrb.mxu3 %v346_v30 }
 0x12e   :  { %vm214_vm5 = vmor %vm212_vm4, %vm213_vm3  ;;  %485 = vmatpush.msrb.mxu1 %v353_v31 }
 0x12f   :  { %v209_v34 = vsub.f32 1.0, %v208_v33  ;;  %v341_v33 = vld [vmem:[#allocation12 + $0x10] sm:$0xff] }
 0x130   :  { %441 = vmatpush.msrb.mxu3 %v341_v33  ;;  %486 = vmatpush.msrb.mxu1 %v348_v37 }
 0x131   :  { %v210_v35 = vmul.f32 %v1784_v32, %v209_v34  ;;  %v2141_v34 = vld [vmem:[#allocation6 + $0x8] sm:$0xff] }
 0x132   :  { %1696 = vmatmul.msk.f32.gmra.mxu3 %vm161_vm0, %v2141_v34  ;;  %1698 = vmatmul.msk.f32.gmra.mxu1 %vm161_vm0, %v2141_v34 }
 0x133   :  { %v211_v36 = vadd.f32 %v1784_v32, %v210_v35  ;;  %v357_v35 = vld [vmem:[#allocation12 + $0x90] sm:$0xff] }
 0x134   :  { %461 = vmatpush.msra.mxu3 %v357_v35 }
 0x135   :  { %v215_v39 = vsel %vm214_vm5, %v1784_v32, %v211_v36  ;;  %v352_v36 = vld [vmem:[#allocation12 + $0x68] sm:$0xff] }
 0x136   :  { %v220_v42 = vsel %vm217_vm6, %v219_v40, %v215_v39  ;;  %v506_v39 = vld [vmem:[#allocation12 + $0x150] sm:$0xff]  ;;  %v347_v40 = vld [vmem:[#allocation12 + $0x40] sm:$0xff]  ;;  %462 = vmatpush.msra.mxu3 %v352_v36  ;;  %vm692_vm6 = vcmask 64512  }
 0x137   :  { %571 = vmatpush.msra.mxu0 %v506_v39 }
 0x138   :  { %463 = vmatpush.msra.mxu3 %v347_v40 }
 0x13a   :  { %1699 = vmatmul.msk.f32.vlgmr.msrb.gmra.mxu3 %vm161_vm0, %v2135_v24 }
 0x142   :  { %1700 = vmatmul.msk.f32.gmra.mxu3 %vm161_vm0, %v2141_v34 }
 0x194   :  { %v230_v41 = vpop.permute.xlu1 %229 }
 0x195   :  { %v232_v43 = vmul.f32 %v230_v41, %v220_v42 }
 0x197   :  { %234 = vrot.lane.b32.xlu2 %v232_v43, %s2025_s15  ;;  %v342_v43 = vld [vmem:[#allocation12 + $0x18] sm:$0xff] }
 0x198   :  { %464 = vmatpush.msra.mxu3 %v342_v43 }
 0x199   :  { %1701 = vmatmul.msk.f32.vlgmr.msra.gmra.mxu3 %vm161_vm0, %v2135_v24 }
 0x19c   :  { %v225_v44 = vpop.permute.xlu1 %224 }
 0x19d   :  { %v227_v45 = vmul.f32 %v225_v44, %v220_v42 }
 0x1a1   :  { %1702 = vmatmul.msk.f32.gmra.mxu3 %vm161_vm0, %v2141_v34 }
 0x1f1   :  { %v235_v46 = vpop.permute.xlu2 %234 }
 0x1f2   :  { %v2121_v47 = vadd.f32 %v235_v46, %v227_v45  ;;  %v505_v45 = vld [vmem:[#allocation12 + $0x148] sm:$0xff] }
 0x1f3   :  { %551 = vmatpush.msrb.mxu3 %v505_v45 }
 0x1f4   :  { %1785 = vtanh.f32 %v2121_v47 }
 0x1fa   :  { %v1786_v48 = vpop.eup %1785 }
 0x1fb   :  { %240 = vrot.lane.b32.xlu2 %v1786_v48, %s2036_s7 }
 0x255   :  { %v241_v53 = vpop.permute.xlu2 %240 }
 0x256   :  { %v243_v54 = vmul.f32 %v241_v53, %v220_v42 }
 0x258   :  { %251 = vrot.lane.b32.xlu0 %v243_v54, %s2025_s15 }
 0x2ca   :  { %v2126_v55 = vpop.permute.xlu0 %251 }
 0x2cb   :  { %1694 = vmatmul.msk.f32.vlgmr.msrb.gmra.mxu0 %vm161_vm0, %v2126_v55 }
 0x348   :  { %v272_v57 = vpop.f32.mrf.mxu0 }
 0x349   :  { %v273_v58 = vadd.f32 %v1774_v56, %v272_v57  ;;  %v343_v56 = vld [vmem:[#allocation12 + $0x20] sm:$0xff]  ;;  %v501_v57 = vld [vmem:[#allocation12 + $0x118] sm:$0xff] }
 0x34a   :  { %487 = vmatpush.msrb.mxu1 %v343_v56  ;;  %532 = vmatpush.msrb.mxu2 %v501_v57 }
 0x34b   :  { %v276_v59 = vsel %vm275_vm7, %v273_v58, -inf  ;;  %1703 = vmatmul.msk.f32.vlgmr.msrb.gmra.mxu1 %vm161_vm0, %v2135_v24 }
 0x34c   :  { %277 = vmax.xlane.f32.xlu1 %v276_v59  ;;  %v503_v59 = vld [vmem:[#allocation12 + $0x128] sm:$0xff]  ;;  %533 = vmatpush.msrb.mxu2 %v498_v60 }
 0x34d   :  { %572 = vmatpush.msra.mxu0 %v503_v59 }
 0x34e   :  { %534 = vmatpush.msrb.mxu2 %v495_v63 }
 0x34f   :  { %573 = vmatpush.msra.mxu0 %v500_v62  ;;  %v763_v62 = vld [vmem:[#allocation10 + $0xb8] sm:$0xff] }
 0x351   :  { %574 = vmatpush.msra.mxu0 %v497_v1 }
 0x353   :  { %734 = vmatpush.msrb.mxu0 %v2141_v34  ;;  %1704 = vmatmul.msk.f32.gmra.mxu1 %vm161_vm0, %v2141_v34  ;;  %v511_v34 = vperm.slane %v508_v27, 1 }
 0x3bf   :  { %v278_v2 = vpop.xlane.xlu1 %277 }
 0x3c0   :  { %v279_v3 = vsub.f32 %v273_v58, %v278_v2  ;;  %v502_v58 = vld [vmem:[#allocation12 + $0x120] sm:$0xff] }
 0x3c1   :  { %552 = vmatpush.msrb.mxu3 %v502_v58  ;;  %v360_v2 = vld [vmem:[#allocation12 + $0xa0] ss:$8 sm:$0xf] }
 0x3c2   :  { %v280_v4 = vmul.f32 1.442695, %v279_v3  ;;  %v361_v3 = vld [vmem:[#allocation12 + $0xa0] ss:$8 sm:$0x10] }
 0x3c3   :  { %553 = vmatpush.msrb.mxu3 %v499_v61  ;;  %v764_v61 = vld [vmem:[#allocation10 + $0xc0] sm:$0xff] }
 0x3c4   :  { %1787 = vpow2.f32 %v280_v4  ;;  %v2160_v4 = vor.u32 %v361_v3, %v360_v2  ;;  %v761_v2 = vld [vmem:[#allocation10 + $0xa8] sm:$0xff]  ;;  %v510_v3 = vperm.slane %v508_v27, 0 }
 0x3c5   :  { %554 = vmatpush.msrb.mxu3 %v496_v0  ;;  %v762_v0 = vld [vmem:[#allocation10 + $0xb0] sm:$0xff] }
 0x3c6   :  { %v364_v7 = vperm.slane %v2160_v4, 0  ;;  %v365_v8 = vperm.slane %v2160_v4, 1  ;;  %v366_v12 = vperm.slane %v2160_v4, 2  ;;  %v367_v22 = vperm.slane %v2160_v4, 3 }
 0x3c7   :  { %711 = vmatpush.msra.mxu3 %v2135_v24  ;;  %v368_v30 = vperm.slane %v2160_v4, 4 }
 0x3ca   :  { %v2131_v5 = vpop.eup %1787 }
 0x3cb   :  { %v282_v6 = vsel %vm275_vm7, %v2131_v5, 0.0 }
 0x3cc   :  { %283 = vadd.xlane.f32.xlu2 %v282_v6  ;;  %v420_v6 = vpop.f32.mrf.mxu1 }
 0x3cd   :  { %v2170_v10 = vadd.f32 %v420_v6, %v365_v8  ;;  %v759_v6 = vld [vmem:[#allocation10 + $0x98] sm:$0xff] }
 0x3d4   :  { %v2195_v25 = vpop.f32.mrf.mxu1 }
 0x3dc   :  { %v489_v26 = vpop.f32.mrf.mxu1 }
 0x3dd   :  { %v490_v35 = vadd.f32 %v489_v26, %v368_v30 }
 0x43f   :  { %v284_v32 = vpop.xlane.xlu2 %283 }
 0x440   :  { %1789 = vrcp.f32 %v284_v32  ;;  %v296_v46 = vand.u32 2147483648, %v284_v32  ;;  %v294_v49 = vand.u32 2147483647, %v284_v32  ;;  %vm290_vm9 = vweird.f32 %v284_v32 }
 0x442   :  { %v297_v51 = vor.u32 1.1754944e-38, %v296_v46  ;;  %vm295_vm11 = vcmp.eq.f32.partialorder %v294_v49, 8.507059e+37  ;;  %v589_v46 = vld [vmem:[#allocation10 + $0x178] sm:$0x1]  ;;  %v145_v49 = vld [vmem:[%s2430_s5] sm:$0x3] }
 0x443   :  { %s2037_s5 = smov 96  }
 0x446   :  { %v1790_v41 = vpop.eup %1789 }
 0x447   :  { %v286_v42 = vmul.f32 %v1790_v41, %v284_v32  ;;  %vm291_vm8 = vweird.f32 %v1790_v41  ;;  %v492_v32 = vpop.f32.mrf.mxu1 }
 0x448   :  { %vm292_vm10 = vmor %vm290_vm9, %vm291_vm8  ;;  %v493_v37 = vadd.f32 %v492_v32, %v368_v30 }
 0x449   :  { %v287_v44 = vsub.f32 1.0, %v286_v42 }
 0x44b   :  { %v288_v48 = vmul.f32 %v1790_v41, %v287_v44 }
 0x44d   :  { %v289_v50 = vadd.f32 %v1790_v41, %v288_v48 }
 0x44f   :  { %v293_v52 = vsel %vm292_vm10, %v1790_v41, %v289_v50  ;;  %v590_v50 = vsub.f32 1.0, %v145_v49 }
 0x450   :  { %v298_v53 = vsel %vm295_vm11, %v297_v51, %v293_v52  ;;  %v147_v52 = vrot.slane %v145_v49, 1 }
 0x451   :  { %v299_v54 = vmul.f32 %v2131_v5, %v298_v53  ;;  %v397_v5 = vpop.f32.mrf.mxu3  ;;  %v2217_v51 = vmul.f32 -1e+09, %v590_v50 }
 0x452   :  { %v2166_v9 = vadd.f32 %v397_v5, %v364_v7  ;;  %v591_v57 = vsub.f32 1.0, %v147_v52  ;;  %v760_v5 = vld [vmem:[#allocation10 + $0xa0] sm:$0xff] }
 0x453   :  { %332 = vmatmul.f32.vlgmr.msra.gmra.mxu2 %v299_v54 }
 0x454   :  { %v2221_v59 = vmul.f32 -1e+09, %v591_v57 }
 0x459   :  { %v400_v11 = vpop.f32.mrf.mxu3 }
 0x45a   :  { %v2177_v20 = vadd.f32 %v400_v11, %v364_v7  ;;  %v758_v11 = vld [vmem:[#allocation10 + $0x90] sm:$0xff] }
 0x461   :  { %v443_v13 = vpop.f32.mrf.mxu3 }
 0x462   :  { %v2173_v14 = vadd.f32 %v443_v13, %v366_v12 }
 0x469   :  { %v446_v17 = vpop.f32.mrf.mxu3 }
 0x46a   :  { %v2175_v19 = vadd.f32 %v446_v17, %v366_v12  ;;  %v757_v12 = vld [vmem:[#allocation10 + $0x88] sm:$0xff]  ;;  %v755_v17 = vld [vmem:[#allocation10 + $0x78] sm:$0xff] }
 0x471   :  { %v466_v23 = vpop.f32.mrf.mxu3 }
 0x472   :  { %v2193_v24 = vadd.f32 %v466_v23, %v367_v22  ;;  %v753_v23 = vld [vmem:[#allocation10 + $0x68] sm:$0xff] }
 0x479   :  { %v2197_v28 = vpop.f32.mrf.mxu3 }
 0x4d6   :  { %v333_v16 = vpop.f32.mrf.mxu2 }
 0x4d7   :  { %v336_v18 = vmax.f32 %v333_v16, 0.0  ;;  %v756_v16 = vld [vmem:[#allocation10 + $0x80] sm:$0xff] }
 0x4d9   :  { %v2180_v21 = vadd.f32 %v336_v18, %v2126_v55  ;;  %v754_v18 = vld [vmem:[#allocation10 + $0x70] sm:$0xff] }
 0x4db   :  { %1705 = vmatmul.msk.f32.vlgmr.msrb.gmra.mxu2 %vm161_vm0, %v2180_v21  ;;  %1706 = vmatmul.msk.f32.vlgmr.msrb.gmra.mxu3 %vm161_vm0, %v2180_v21 }
 0x4dc   :  { %1707 = vmatmul.msk.f32.vlgmr.msra.gmra.mxu0 %vm161_vm0, %v2180_v21  ;;  %1718 = vmatpush.xpose.msk.msrb.mxu3 %vm163_vm1, %v2177_v20 }
 0x559   :  { %v576_v31 = vpop.f32.mrf.mxu0 }
 0x55a   :  { %v2200_v33 = vadd.f32 %v576_v31, %v512_v29 }
 0x55c   :  { %v581_v36 = vperm.slane %v2200_v33, 0  ;;  %v580_v38 = vrot.slane %v2200_v33, 1 }
 0x55e   :  { %v585_v39 = vadd.f32 %v581_v36, %v490_v35  ;;  %v582_v40 = vperm.slane %v580_v38, 0  ;;  %v556_v41 = vpop.f32.mrf.mxu3  ;;  %v536_v53 = vpop.f32.mrf.mxu2 }
 0x55f   :  { %v2204_v42 = vadd.f32 %v556_v41, %v511_v34  ;;  %v537_v7 = vadd.f32 %v536_v53, %v510_v3 }
 0x560   :  { %1791 = vtanh.f32 %v585_v39  ;;  %v586_v43 = vadd.f32 %v582_v40, %v493_v37 }
 0x561   :  { %v867_v44 = vrot.slane %v2204_v42, 2  ;;  %v860_v13 = vrot.slane %v537_v7, 6 }
 0x562   :  { %1793 = vtanh.f32 %v586_v43 }
 0x563   :  { %868 = vrot.lane.b32.xlu1 %v867_v44, %s2036_s7 }
 0x566   :  { %v1792_v45 = vpop.eup %1791 }
 0x567   :  { %1708 = vmatpush.xpose.msk.msra.mxu1 %vm161_vm0, %v1792_v45 }
 0x568   :  { %v1794_v48 = vpop.eup %1793 }
 0x569   :  { %1710 = vmatpush.xpose.msk.msra.mxu2 %vm161_vm0, %v1794_v48 }
 0x56a   :  { %1709 = vmatmul.msk.f32.vlgmr.msra.gmra.mxu1 %vm161_vm0, %v589_v46 }
 0x56b   :  { %774 = vmatpush.msrb.mxu1 %v764_v61 }
 0x56c   :  { %1711 = vmatmul.msk.f32.vlgmr.msra.gmra.mxu2 %vm161_vm0, %v589_v46 }
 0x56d   :  { %1716 = vmatpush.xpose.msk.msrb.mxu2 %vm163_vm1, %v2166_v9  ;;  %775 = vmatpush.msrb.mxu1 %v763_v62 }
 0x56f   :  { %776 = vmatpush.msrb.mxu1 %v762_v0 }
 0x571   :  { %777 = vmatpush.msrb.mxu1 %v761_v2 }
 0x573   :  { %778 = vmatpush.msrb.mxu1 %v760_v5 }
 0x575   :  { %779 = vmatpush.msrb.mxu1 %v759_v6 }
 0x577   :  { %780 = vmatpush.msrb.mxu1 %v758_v11 }
 0x579   :  { %781 = vmatpush.msrb.mxu1 %v757_v12 }
 0x57b   :  { %782 = vmatpush.msrb.mxu1 %v756_v16 }
 0x57d   :  { %783 = vmatpush.msrb.mxu1 %v755_v17 }
 0x57f   :  { %784 = vmatpush.msrb.mxu1 %v754_v18 }
 0x581   :  { %785 = vmatpush.msrb.mxu1 %v753_v23 }
 0x583   :  { %1325 = vmatpush.msra.mxu1 %v2175_v19 }
 0x5d5   :  { %v869_v40 = vpop.permute.xlu1 %868 }
 0x5e7   :  { %v617_v54 = vpop.f32.mrf.mxu1 }
 0x5e8   :  { %v618_v56 = vadd.f32 %v617_v54, %v2217_v51 }
 0x5ea   :  { %v644_v58 = vsel %vm643_vm12, %v618_v56, -inf }
 0x5eb   :  { %645 = vmax.xlane.f32.xlu0 %v644_v58 }
 0x5ef   :  { %v640_v60 = vpop.f32.mrf.mxu2 }
 0x5f0   :  { %v641_v63 = vadd.f32 %v640_v60, %v2221_v59 }
 0x5f2   :  { %v647_v1 = vsel %vm643_vm12, %v641_v63, -inf }
 0x5f3   :  { %648 = vmax.xlane.f32.xlu2 %v647_v1 }
 0x5ff   :  { %861 = vrot.lane.b32.xlu0 %v860_v13, %s2036_s7 }
 0x607   :  { %833 = vrot.lane.b32.xlu0 %v2166_v9, %s2036_s7  ;;  %v865_v9 = vrot.slane %v2204_v42, 4  ;;  %v424_v42 = vadd.f32 %v2195_v25, %v365_v8 }
 0x60f   :  { %839 = vrot.lane.b32.xlu0 %v2170_v10, %s2036_s7 }
 0x65e   :  { %v646_v26 = vpop.xlane.xlu0 %645 }
 0x65f   :  { %v650_v27 = vsub.f32 %v618_v56, %v646_v26 }
 0x661   :  { %v652_v29 = vmul.f32 1.442695, %v650_v27 }
 0x663   :  { %1795 = vpow2.f32 %v652_v29 }
 0x666   :  { %v649_v30 = vpop.xlane.xlu2 %648 }
 0x667   :  { %v651_v31 = vsub.f32 %v641_v63, %v649_v30 }
 0x669   :  { %v1796_v32 = vpop.eup %1795  ;;  %v654_v34 = vmul.f32 1.442695, %v651_v31 }
 0x66a   :  { %v656_v35 = vsel %vm643_vm12, %v1796_v32, 0.0 }
 0x66b   :  { %1797 = vpow2.f32 %v654_v34  ;;  %657 = vadd.xlane.f32.xlu1 %v656_v35 }
 0x671   :  { %v1798_v36 = vpop.eup %1797  ;;  %v862_v37 = vpop.permute.xlu0 %861 }
 0x672   :  { %v871_v38 = vsel %vm275_vm7, %v537_v7, %v862_v37  ;;  %v659_v39 = vsel %vm643_vm12, %v1798_v36, 0.0 }
 0x673   :  { %v873_v41 = vsel %vm872_vm13, %v871_v38, %v865_v9  ;;  %660 = vadd.xlane.f32.xlu2 %v659_v39  ;;  %vm742_vm13 = vcmask 1041409  }
 0x674   :  { %v2235_v43 = vsel %vm874_vm14, %v873_v41, %v869_v40 }
 0x675   :  { %1717 = vmatmul.msk.f32.vlgmr.msrb.gmra.mxu2 %vm163_vm1, %v2235_v43  ;;  %v879_v0 = vrot.slane %v2235_v43, 3  ;;  %v877_v13 = vrot.slane %v2235_v43, 1  ;;  %v882_v16 = vrot.slane %v2235_v43, 6  ;;  %v880_v18 = vrot.slane %v2235_v43, 4 }
 0x676   :  { %v881_v23 = vrot.slane %v2235_v43, 5  ;;  %v883_v26 = vrot.slane %v2235_v43, 7 }
 0x679   :  { %v834_v44 = vpop.permute.xlu0 %833 }
 0x67a   :  { %1720 = vmatpush.xpose.msk.msra.mxu0 %vm163_vm1, %v834_v44 }
 0x681   :  { %v840_v60 = vpop.permute.xlu0 %839 }
 0x684   :  { %841 = vrot.lane.b32.xlu1 %v424_v42, %s2036_s7 }
 0x68b   :  { %835 = vrot.lane.b32.xlu2 %v2177_v20, %s2036_s7 }
 0x6de   :  { %v658_v45 = vpop.xlane.xlu1 %657 }
 0x6df   :  { %1799 = vrcp.f32 %v658_v45  ;;  %v673_v52 = vand.u32 2147483648, %v658_v45  ;;  %v671_v54 = vand.u32 2147483647, %v658_v45  ;;  %vm667_vm3 = vweird.f32 %v658_v45 }
 0x6e1   :  { %v674_v8 = vor.u32 1.1754944e-38, %v673_v52  ;;  %vm672_vm5 = vcmp.eq.f32.partialorder %v671_v54, 8.507059e+37 }
 0x6e5   :  { %v1800_v46 = vpop.eup %1799 }
 0x6e6   :  { %v663_v48 = vmul.f32 %v1800_v46, %v658_v45  ;;  %v661_v49 = vpop.xlane.xlu2 %660  ;;  %vm668_vm15 = vweird.f32 %v1800_v46 }
 0x6e7   :  { %1801 = vrcp.f32 %v661_v49  ;;  %vm669_vm4 = vmor %vm667_vm3, %vm668_vm15  ;;  %v688_v1 = vand.u32 2147483648, %v661_v49  ;;  %v686_v3 = vand.u32 2147483647, %v661_v49  ;;  %vm682_vm9 = vweird.f32 %v661_v49 }
 0x6e8   :  { %v664_v50 = vsub.f32 1.0, %v663_v48 }
 0x6e9   :  { %v689_v6 = vor.u32 1.1754944e-38, %v688_v1  ;;  %vm687_vm11 = vcmp.eq.f32.partialorder %v686_v3, 8.507059e+37 }
 0x6ea   :  { %v665_v53 = vmul.f32 %v1800_v46, %v664_v50 }
 0x6ec   :  { %v666_v56 = vadd.f32 %v1800_v46, %v665_v53 }
 0x6ed   :  { %v1802_v57 = vpop.eup %1801 }
 0x6ee   :  { %v670_v25 = vsel %vm669_vm4, %v1800_v46, %v666_v56  ;;  %v678_v58 = vmul.f32 %v1802_v57, %v661_v49  ;;  %v836_v20 = vpop.permute.xlu2 %835  ;;  %vm683_vm8 = vweird.f32 %v1802_v57 }
 0x6ef   :  { %v675_v61 = vsel %vm672_vm5, %v674_v8, %v670_v25  ;;  %1722 = vmatpush.xpose.msk.msra.mxu2 %vm163_vm1, %v836_v20  ;;  %vm684_vm10 = vmor %vm682_vm9, %vm683_vm8 }
 0x6f0   :  { %v679_v62 = vsub.f32 1.0, %v678_v58  ;;  %v676_v63 = vmul.f32 %v1796_v32, %v675_v61 }
 0x6f2   :  { %v680_v2 = vmul.f32 %v1802_v57, %v679_v62  ;;  %1712 = vmatmul.msk.f32.vlgmr.msra.gmra.mxu3 %vm692_vm6, %v676_v63  ;;  %1723 = vmatmul.msk.f32.vlgmr.msra.gmra.mxu2 %vm163_vm1, %v879_v0 }
 0x6f3   :  { %1728 = vmatpush.xpose.msk.msrb.mxu2 %vm163_vm1, %v840_v60  ;;  %1724 = vmatpush.xpose.msk.msra.mxu3 %vm163_vm1, %v2170_v10  ;;  %v878_v10 = vrot.slane %v2235_v43, 2 }
 0x6f4   :  { %v681_v5 = vadd.f32 %v1802_v57, %v680_v2 }
 0x6f6   :  { %v685_v7 = vsel %vm684_vm10, %v1802_v57, %v681_v5  ;;  %v842_v17 = vpop.permute.xlu1 %841 }
 0x6f7   :  { %v690_v11 = vsel %vm687_vm11, %v689_v6, %v685_v7 }
 0x6f8   :  { %v691_v12 = vmul.f32 %v1798_v36, %v690_v11  ;;  %v905_v27 = vpop.f32.mrf.mxu2 }
 0x6f9   :  { %v1076_v25 = vmul.f32 0.125, %v905_v27 }
 0x6fa   :  { %1713 = vmatmul.msk.f32.vlgmr.msrb.gmra.mxu0 %vm692_vm6, %v691_v12  ;;  %1719 = vmatmul.msk.f32.vlgmr.msrb.gmra.mxu3 %vm163_vm1, %v877_v13 }
 0x6fb   :  { %1726 = vmatpush.xpose.msk.msrb.mxu0 %vm163_vm1, %v424_v42  ;;  %1729 = vmatmul.msk.f32.vlgmr.msrb.gmra.mxu2 %vm163_vm1, %v882_v16  ;;  %v1084_v60 = vadd.f32 %v1076_v25, %v2217_v51 }
 0x6fc   :  { %1730 = vmatpush.xpose.msk.msrb.mxu3 %vm163_vm1, %v842_v17 }
 0x6fd   :  { %v1092_v61 = vsel %vm643_vm12, %v1084_v60, -inf }
 0x702   :  { %1721 = vmatmul.msk.f32.vlgmr.msra.gmra.mxu0 %vm163_vm1, %v878_v10  ;;  %1725 = vmatmul.msk.f32.vlgmr.msra.gmra.mxu3 %vm163_vm1, %v880_v18 }
 0x703   :  { %1302 = vmatpush.msra.mxu0 %v2173_v14 }
 0x70a   :  { %1727 = vmatmul.msk.f32.vlgmr.msrb.gmra.mxu0 %vm163_vm1, %v881_v23  ;;  %1731 = vmatmul.msk.f32.vlgmr.msrb.gmra.mxu3 %vm163_vm1, %v883_v26 }
 0x70b   :  { %1394 = vmatpush.msrb.mxu0 %v2193_v24 }
 0x775   :  { %v713_v29 = vpop.f32.mrf.mxu3  ;;  %v977_v30 = vpop.f32.mrf.mxu2 }
 0x776   :  { %v1079_v31 = vmul.f32 0.125, %v977_v30 }
 0x777   :  { %v736_v32 = vpop.f32.mrf.mxu0 }
 0x778   :  { %v741_v34 = vrot.slane %v736_v32, 7  ;;  %v1087_v35 = vadd.f32 %v1079_v31, %v2221_v59 }
 0x77a   :  { %v1101_v36 = vsel %vm643_vm12, %v1087_v35, -inf  ;;  %v2273_v9 = vsel %vm742_vm13, %v741_v34, %v713_v29 }
 0x77b   :  { %1102 = vmax.xlane.f32.xlu2 %v1101_v36 }
 0x77d   :  { %v929_v37 = vpop.f32.mrf.mxu3 }
 0x77e   :  { %v1049_v38 = vpop.f32.mrf.mxu2  ;;  %v1077_v45 = vmul.f32 0.125, %v929_v37 }
 0x77f   :  { %v1082_v39 = vmul.f32 0.125, %v1049_v38  ;;  %v953_v40 = vpop.f32.mrf.mxu0 }
 0x780   :  { %v1078_v41 = vmul.f32 0.125, %v953_v40  ;;  %v1085_v49 = vadd.f32 %v1077_v45, %v2221_v59 }
 0x781   :  { %v1090_v43 = vadd.f32 %v1082_v39, %v2217_v51 }
 0x782   :  { %v1086_v44 = vadd.f32 %v1078_v41, %v2217_v51  ;;  %v1095_v53 = vsel %vm643_vm12, %v1085_v49, -inf }
 0x783   :  { %v1110_v42 = vsel %vm643_vm12, %v1090_v43, -inf }
 0x784   :  { %1111 = vmax.xlane.f32.xlu2 %v1110_v42  ;;  %v1098_v46 = vsel %vm643_vm12, %v1086_v44, -inf  ;;  %v1758_v42 = vpack.i.bf16 %v2173_v14, %v2175_v19  ;;  %v2325_v14 = vadd.f32 %v2197_v28, %v367_v22 }
 0x785   :  { %v1001_v48 = vpop.f32.mrf.mxu3  ;;  %1099 = vmax.xlane.f32.xlu1 %v1098_v46 }
 0x786   :  { %v1080_v5 = vmul.f32 0.125, %v1001_v48  ;;  %v1763_v19 = vpack.i.bf16 %v2193_v24, %v2325_v14 }
 0x787   :  { %v1025_v50 = vpop.f32.mrf.mxu0 }
 0x788   :  { %v1081_v52 = vmul.f32 0.125, %v1025_v50  ;;  %v1088_v13 = vadd.f32 %v1080_v5, %v2217_v51 }
 0x78a   :  { %v1089_v8 = vadd.f32 %v1081_v52, %v2221_v59  ;;  %v1104_v18 = vsel %vm643_vm12, %v1088_v13, -inf }
 0x78c   :  { %v1107_v20 = vsel %vm643_vm12, %v1089_v8, -inf }
 0x78d   :  { %v1073_v54 = vpop.f32.mrf.mxu3  ;;  %1096 = vmax.xlane.f32.xlu1 %v1095_v53 }
 0x78e   :  { %v1083_v56 = vmul.f32 0.125, %v1073_v54 }
 0x790   :  { %v1091_v57 = vadd.f32 %v1083_v56, %v2221_v59 }
 0x792   :  { %v1113_v58 = vsel %vm643_vm12, %v1091_v57, -inf }
 0x793   :  { %1114 = vmax.xlane.f32.xlu0 %v1113_v58 }
 0x795   :  { %1108 = vmax.xlane.f32.xlu1 %v1107_v20 }
 0x79b   :  { %1093 = vmax.xlane.f32.xlu0 %v1092_v61 }
 0x7ee   :  { %v1103_v62 = vpop.xlane.xlu2 %1102 }
 0x7ef   :  { %v1119_v63 = vsub.f32 %v1087_v35, %v1103_v62 }
 0x7f1   :  { %v1130_v0 = vmul.f32 1.442695, %v1119_v63 }
 0x7f3   :  { %1803 = vpow2.f32 %v1130_v0 }
 0x7f7   :  { %v1112_v1 = vpop.xlane.xlu2 %1111 }
 0x7f8   :  { %v1122_v2 = vsub.f32 %v1090_v43, %v1112_v1  ;;  %v1100_v3 = vpop.xlane.xlu1 %1099 }
 0x7f9   :  { %v2287_v59 = vpop.eup %1803  ;;  %v1118_v7 = vsub.f32 %v1086_v44, %v1100_v3 }
 0x7fa   :  { %v1136_v6 = vmul.f32 1.442695, %v1122_v2  ;;  %v1149_v11 = vsel %vm643_vm12, %v2287_v59, 0.0 }
 0x7fb   :  { %1150 = vadd.xlane.f32.xlu2 %v1149_v11  ;;  %v1128_v12 = vmul.f32 1.442695, %v1118_v7 }
 0x7fc   :  { %1805 = vpow2.f32 %v1136_v6 }
 0x7fd   :  { %1807 = vpow2.f32 %v1128_v12 }
 0x800   :  { %v1097_v16 = vpop.xlane.xlu1 %1096 }
 0x801   :  { %v1117_v10 = vsub.f32 %v1085_v49, %v1097_v16 }
 0x802   :  { %v2292_v17 = vpop.eup %1805 }
 0x803   :  { %1105 = vmax.xlane.f32.xlu2 %v1104_v18  ;;  %v1158_v23 = vsel %vm643_vm12, %v2292_v17, 0.0  ;;  %v1126_v26 = vmul.f32 1.442695, %v1117_v10  ;;  %v2297_v30 = vpop.eup %1807 }
 0x804   :  { %1159 = vadd.xlane.f32.xlu0 %v1158_v23  ;;  %v1146_v51 = vsel %vm643_vm12, %v2297_v30, 0.0 }
 0x805   :  { %1809 = vpow2.f32 %v1126_v26 }
 0x806   :  { %v1115_v27 = vpop.xlane.xlu0 %1114 }
 0x807   :  { %v1123_v29 = vsub.f32 %v1091_v57, %v1115_v27 }
 0x808   :  { %v1109_v34 = vpop.xlane.xlu1 %1108 }
 0x809   :  { %v1138_v31 = vmul.f32 1.442695, %v1123_v29  ;;  %v1121_v39 = vsub.f32 %v1089_v8, %v1109_v34 }
 0x80b   :  { %1811 = vpow2.f32 %v1138_v31  ;;  %v2301_v36 = vpop.eup %1809  ;;  %v1134_v43 = vmul.f32 1.442695, %v1121_v39 }
 0x80c   :  { %1147 = vadd.xlane.f32.xlu0 %v1146_v51  ;;  %v1143_v41 = vsel %vm643_vm12, %v2301_v36, 0.0 }
 0x80e   :  { %v1094_v32 = vpop.xlane.xlu0 %1093 }
 0x80f   :  { %v1116_v35 = vsub.f32 %v1084_v60, %v1094_v32 }
 0x811   :  { %v2303_v37 = vpop.eup %1811  ;;  %v1124_v38 = vmul.f32 1.442695, %v1116_v35 }
 0x812   :  { %v1161_v40 = vsel %vm643_vm12, %v2303_v37, 0.0 }
 0x813   :  { %1813 = vpow2.f32 %v1124_v38  ;;  %1162 = vadd.xlane.f32.xlu1 %v1161_v40 }
 0x814   :  { %1144 = vadd.xlane.f32.xlu0 %v1143_v41  ;;  %1815 = vpow2.f32 %v1134_v43 }
 0x819   :  { %v2309_v44 = vpop.eup %1813 }
 0x81a   :  { %v1140_v45 = vsel %vm643_vm12, %v2309_v44, 0.0  ;;  %v2316_v46 = vpop.eup %1815 }
 0x81b   :  { %1759 = vrot.lane.b32.xlu2 %v1758_v42, %s2036_s7  ;;  %v1155_v48 = vsel %vm643_vm12, %v2316_v46, 0.0 }
 0x81c   :  { %1141 = vadd.xlane.f32.xlu0 %v1140_v45 }
 0x823   :  { %744 = vrot.lane.b32.xlu2 %v2273_v9, %s2025_s15 }
 0x824   :  { %1156 = vadd.xlane.f32.xlu0 %v1155_v48 }
 0x82c   :  { %1764 = vrot.lane.b32.xlu1 %v1763_v19, %s2036_s7 }
 0x838   :  { %748 = vrot.lane.b32.xlu0 %v2112_v15, %s2036_s7 }
 0x86e   :  { %v1151_v49 = vpop.xlane.xlu2 %1150 }
 0x86f   :  { %1817 = vrcp.f32 %v1151_v49  ;;  %v1220_v56 = vand.u32 2147483648, %v1151_v49  ;;  %v1218_v57 = vand.u32 2147483647, %v1151_v49  ;;  %vm1214_vm15 = vweird.f32 %v1151_v49 }
 0x871   :  { %v1221_v8 = vor.u32 1.1754944e-38, %v1220_v56  ;;  %vm1219_vm4 = vcmp.eq.f32.partialorder %v1218_v57, 8.507059e+37 }
 0x875   :  { %v1818_v9 = vpop.eup %1817 }
 0x876   :  { %v1210_v50 = vmul.f32 %v1818_v9, %v1151_v49  ;;  %v1106_v52 = vpop.xlane.xlu2 %1105  ;;  %vm1215_vm14 = vweird.f32 %v1818_v9 }
 0x877   :  { %v1120_v53 = vsub.f32 %v1088_v13, %v1106_v52  ;;  %v2332_v54 = vpop.xlane.xlu0 %1159  ;;  %vm1216_vm3 = vmor %vm1214_vm15, %vm1215_vm14 }
 0x878   :  { %v1211_v4 = vsub.f32 1.0, %v1210_v50  ;;  %v1265_v40 = vand.u32 2147483648, %v2332_v54  ;;  %vm1259_vm14 = vweird.f32 %v2332_v54  ;;  %v1263_v42 = vand.u32 2147483647, %v2332_v54 }
 0x879   :  { %v1132_v22 = vmul.f32 1.442695, %v1120_v53 }
 0x87a   :  { %v1212_v28 = vmul.f32 %v1818_v9, %v1211_v4  ;;  %v1266_v52 = vor.u32 1.1754944e-38, %v1265_v40 }
 0x87b   :  { %1819 = vpow2.f32 %v1132_v22 }
 0x87c   :  { %v1213_v24 = vadd.f32 %v1818_v9, %v1212_v28 }
 0x87e   :  { %v1217_v15 = vsel %vm1216_vm3, %v1818_v9, %v1213_v24  ;;  %v1760_v25 = vpop.permute.xlu2 %1759 }
 0x87f   :  { %v1222_v58 = vsel %vm1219_vm4, %v1221_v8, %v1217_v15  ;;  %v1762_v20 = vunpack.i.h.bf16 %v1760_v25  ;;  %v1148_v60 = vpop.xlane.xlu0 %1147  ;;  %v1761_v61 = vunpack.i.l.bf16 %v1760_v25 }
 0x880   :  { %1821 = vrcp.f32 %v1148_v60  ;;  %v1223_v63 = vmul.f32 %v2287_v59, %v1222_v58  ;;  %v1205_v12 = vand.u32 2147483648, %v1148_v60  ;;  %v1203_v59 = vand.u32 2147483647, %v1148_v60 }
 0x881   :  { %v2334_v62 = vpop.eup %1819  ;;  %1823 = vrcp.f32 %v2332_v54  ;;  %1348 = vmatpush.msra.mxu2 %v1762_v20  ;;  %1371 = vmatpush.msra.mxu3 %v1761_v61  ;;  %vm1199_vm8 = vweird.f32 %v1148_v60 }
 0x882   :  { %v1152_v0 = vsel %vm643_vm12, %v2334_v62, 0.0  ;;  %1735 = vmatmul.msk.f32.vlgmr.msra.gmra.mxu3 %vm692_vm6, %v1223_v63  ;;  %v1206_v23 = vor.u32 1.1754944e-38, %v1205_v12  ;;  %vm1204_vm9 = vcmp.eq.f32.partialorder %v1203_v59, 8.507059e+37 }
 0x883   :  { %1153 = vadd.xlane.f32.xlu1 %v1152_v0 }
 0x886   :  { %v1822_v1 = vpop.eup %1821  ;;  %v1163_v2 = vpop.xlane.xlu1 %1162 }
 0x887   :  { %v1824_v3 = vpop.eup %1823  ;;  %v1195_v5 = vmul.f32 %v1822_v1, %v1148_v60  ;;  %v2341_v6 = vpop.xlane.xlu0 %1144  ;;  %1825 = vrcp.f32 %v1163_v2  ;;  %vm1200_vm5 = vweird.f32 %v1822_v1  ;;  %v1280_v45 = vand.u32 2147483648, %v1163_v2 }
 0x888   :  { %v1255_v11 = vmul.f32 %v1824_v3, %v2332_v54  ;;  %vm1201_vm12 = vmor %vm1199_vm8, %vm1200_vm5  ;;  %vm1260_vm10 = vweird.f32 %v1824_v3  ;;  %vm1274_vm3 = vweird.f32 %v1163_v2  ;;  %v1278_v49 = vand.u32 2147483647, %v1163_v2 }
 0x889   :  { %v1196_v7 = vsub.f32 1.0, %v1195_v5  ;;  %vm2354_vm15 = vmor %vm1259_vm14, %vm1260_vm10  ;;  %vm1264_vm8 = vcmp.eq.f32.partialorder %v1263_v42, 8.507059e+37  ;;  %v1281_v22 = vor.u32 1.1754944e-38, %v1280_v45  ;;  %v1607_v5 = vld [vmem:[#allocation10 + $0x2e8] sm:$0xff] }
 0x88a   :  { %v1256_v18 = vsub.f32 1.0, %v1255_v11 }
 0x88b   :  { %v1197_v13 = vmul.f32 %v1822_v1, %v1196_v7  ;;  %v1606_v7 = vld [vmem:[#allocation10 + $0x2e0] sm:$0xff] }
 0x88c   :  { %v1257_v32 = vmul.f32 %v1824_v3, %v1256_v18  ;;  %v1188_v18 = vand.u32 2147483647, %v2341_v6 }
 0x88d   :  { %v1198_v16 = vadd.f32 %v1822_v1, %v1197_v13  ;;  %v1826_v10 = vpop.eup %1825  ;;  %v2371_v13 = vpop.permute.xlu2 %744 }
 0x88e   :  { %v1270_v27 = vmul.f32 %v1826_v10, %v1163_v2  ;;  %v1258_v39 = vadd.f32 %v1824_v3, %v1257_v32  ;;  %vm1275_vm11 = vweird.f32 %v1826_v10 }
 0x88f   :  { %v1202_v26 = vsel %vm1201_vm12, %v1822_v1, %v1198_v16  ;;  %v1142_v29 = vpop.xlane.xlu0 %1141  ;;  %vm1276_vm4 = vmor %vm1274_vm3, %vm1275_vm11  ;;  %vm1279_vm12 = vcmp.eq.f32.partialorder %v1278_v49, 8.507059e+37  ;;  %v1190_v16 = vand.u32 2147483648, %v2341_v6 }
 0x890   :  { %v1207_v31 = vsel %vm1204_vm9, %v1206_v23, %v1202_v26  ;;  %1827 = vrcp.f32 %v1142_v29  ;;  %v1271_v51 = vsub.f32 1.0, %v1270_v27  ;;  %v1262_v50 = vsel %vm2354_vm15, %v1824_v3, %v1258_v39 }
 0x891   :  { %v1208_v34 = vmul.f32 %v2297_v30, %v1207_v31  ;;  %1829 = vrcp.f32 %v2341_v6  ;;  %v1173_v53 = vand.u32 2147483647, %v1142_v29  ;;  %v1175_v4 = vand.u32 2147483648, %v1142_v29 }
 0x892   :  { %v1272_v35 = vmul.f32 %v1826_v10, %v1271_v51  ;;  %v1267_v57 = vsel %vm1264_vm8, %v1266_v52, %v1262_v50  ;;  %vm1169_vm9 = vweird.f32 %v1142_v29  ;;  %vm1184_vm15 = vweird.f32 %v2341_v6  ;;  %v1509_v50 = vld [vmem:[#allocation10 + $0x1f8] sm:$0xff] }
 0x893   :  { %1734 = vmatmul.msk.f32.vlgmr.msra.gmra.mxu2 %vm692_vm6, %v1208_v34  ;;  %v1176_v15 = vor.u32 1.1754944e-38, %v1175_v4  ;;  %vm1174_vm11 = vcmp.eq.f32.partialorder %v1173_v53, 8.507059e+37  ;;  %v1268_v0 = vmul.f32 %v2292_v17, %v1267_v57  ;;  %v1605_v17 = vld [vmem:[#allocation10 + $0x2d8] sm:$0xff]  ;;  %v1191_v31 = vor.u32 1.1754944e-38, %v1190_v16  ;;  %v1508_v53 = vld [vmem:[#allocation10 + $0x1f0] sm:$0xff]  ;;  %v1506_v57 = vld [vmem:[#allocation10 + $0x1e0] sm:$0xff] }
 0x894   :  { %v1273_v41 = vadd.f32 %v1826_v10, %v1272_v35  ;;  %v1525_v52 = vld [vmem:[#allocation10 + $0x278] sm:$0xff]  ;;  %v1524_v4 = vld [vmem:[#allocation10 + $0x270] sm:$0xff] }
 0x895   :  { %v1516_v16 = vld [vmem:[#allocation10 + $0x230] sm:$0xff] }
 0x896   :  { %v1828_v38 = vpop.eup %1827  ;;  %v1277_v54 = vsel %vm1276_vm4, %v1826_v10, %v1273_v41  ;;  %v751_v10 = vsel %vm161_vm0, %v2180_v21, %v2371_v13  ;;  %vm1189_vm4 = vcmp.eq.f32.partialorder %v1188_v18, 8.507059e+37  ;;  %v1515_v18 = vld [vmem:[#allocation10 + $0x228] sm:$0xff] }
 0x897   :  { %v1165_v43 = vmul.f32 %v1828_v38, %v1142_v29  ;;  %v2350_v48 = vpop.xlane.xlu0 %1156  ;;  %v2352_v30 = vpop.eup %1829  ;;  %vm1170_vm5 = vweird.f32 %v1828_v38  ;;  %v1282_v8 = vsel %vm1279_vm12, %v1281_v22, %v1277_v54  ;;  %v1523_v22 = vld [vmem:[#allocation10 + $0x268] sm:$0xff] }
 0x898   :  { %1831 = vrcp.f32 %v2350_v48  ;;  %v1180_v28 = vmul.f32 %v2352_v30, %v2341_v6  ;;  %vm1171_vm10 = vmor %vm1169_vm9, %vm1170_vm5  ;;  %v1283_v3 = vmul.f32 %v2303_v37, %v1282_v8  ;;  %vm1185_vm14 = vweird.f32 %v2352_v30  ;;  %v1505_v8 = vld [vmem:[#allocation10 + $0x1d8] sm:$0xff] }
 0x899   :  { %v1166_v9 = vsub.f32 1.0, %v1165_v43  ;;  %vm1186_vm3 = vmor %vm1184_vm15, %vm1185_vm14  ;;  %v1250_v6 = vand.u32 2147483648, %v2350_v48  ;;  %vm1244_vm8 = vweird.f32 %v2350_v48  ;;  %v1248_v34 = vand.u32 2147483647, %v2350_v48 }
 0x89a   :  { %v1181_v60 = vsub.f32 1.0, %v1180_v28 }
 0x89b   :  { %v1167_v56 = vmul.f32 %v1828_v38, %v1166_v9  ;;  %vm1249_vm9 = vcmp.eq.f32.partialorder %v1248_v34, 8.507059e+37  ;;  %v1512_v34 = vld [vmem:[#allocation10 + $0x210] sm:$0xff] }
 0x89c   :  { %v1182_v11 = vmul.f32 %v2352_v30, %v1181_v60  ;;  %v1503_v60 = vld [vmem:[#allocation10 + $0x1c8] sm:$0xff] }
 0x89d   :  { %v1168_v24 = vadd.f32 %v1828_v38, %v1167_v56  ;;  %v1507_v56 = vld [vmem:[#allocation10 + $0x1e8] sm:$0xff] }
 0x89e   :  { %v1765_v25 = vpop.permute.xlu1 %1764  ;;  %v1832_v1 = vpop.eup %1831  ;;  %v1183_v37 = vadd.f32 %v2352_v30, %v1182_v11 }
 0x89f   :  { %v1172_v58 = vsel %vm1171_vm10, %v1828_v38, %v1168_v24  ;;  %v1767_v20 = vunpack.i.h.bf16 %v1765_v25  ;;  %v1766_v63 = vunpack.i.l.bf16 %v1765_v25  ;;  %v1240_v12 = vmul.f32 %v1832_v1, %v2350_v48  ;;  %v1522_v24 = vld [vmem:[#allocation10 + $0x260] sm:$0xff]  ;;  %v1520_v25 = vld [vmem:[#allocation10 + $0x250] sm:$0xff] }
 0x8a0   :  { %v1177_v61 = vsel %vm1174_vm11, %v1176_v15, %v1172_v58  ;;  %v1187_v27 = vsel %vm1186_vm3, %v2352_v30, %v1183_v37  ;;  %vm1245_vm5 = vweird.f32 %v1832_v1  ;;  %v1251_v38 = vor.u32 1.1754944e-38, %v1250_v6  ;;  %v1504_v15 = vld [vmem:[#allocation10 + $0x1d0] sm:$0xff]  ;;  %v1517_v37 = vld [vmem:[#allocation10 + $0x238] sm:$0xff] }
 0x8a1   :  { %1440 = vmatpush.msrb.mxu2 %v1767_v20  ;;  %v1178_v2 = vmul.f32 %v2309_v44, %v1177_v61  ;;  %1463 = vmatpush.msrb.mxu3 %v1766_v63  ;;  %v1604_v44 = vld [vmem:[#allocation10 + $0x2d0] sm:$0xff]  ;;  %v1241_v59 = vsub.f32 1.0, %v1240_v12  ;;  %v1192_v51 = vsel %vm1189_vm4, %v1191_v31, %v1187_v27  ;;  %vm1246_vm12 = vmor %vm1244_vm8, %vm1245_vm5  ;;  %v1775_v20 = vld [vmem:[#allocation10 + $0xc8] ss:$0 sm:$0xff] }
 0x8a2   :  { %1738 = vmatmul.msk.f32.vlgmr.msrb.gmra.mxu2 %vm692_vm6, %v1268_v0  ;;  %1739 = vmatmul.msk.f32.vlgmr.msrb.gmra.mxu3 %vm692_vm6, %v1283_v3  ;;  %v1519_v61 = vld [vmem:[#allocation10 + $0x248] sm:$0xff]  ;;  %v1518_v3 = vld [vmem:[#allocation10 + $0x240] sm:$0xff]  ;;  %v1513_v31 = vld [vmem:[#allocation10 + $0x218] sm:$0xff] }
 0x8a3   :  { %1732 = vmatmul.msk.f32.vlgmr.msra.gmra.mxu0 %vm692_vm6, %v1178_v2  ;;  %1624 = vmatpush.msra.mxu3 %v1607_v5  ;;  %v1242_v29 = vmul.f32 %v1832_v1, %v1241_v59  ;;  %v1502_v2 = vld [vmem:[#allocation10 + $0x1c0] sm:$0xff]  ;;  %v1500_v59 = vld [vmem:[#allocation10 + $0x1b0] sm:$0xff] }
 0x8a4   :  { %1528 = vmatpush.msra.mxu0 %v1509_v50 }
 0x8a5   :  { %1625 = vmatpush.msra.mxu3 %v1606_v7  ;;  %v1243_v32 = vadd.f32 %v1832_v1, %v1242_v29  ;;  %v1497_v29 = vld [vmem:[#allocation10 + $0x198] sm:$0xff] }
 0x8a6   :  { %1529 = vmatpush.msra.mxu0 %v1508_v53 }
 0x8a7   :  { %1626 = vmatpush.msra.mxu3 %v1605_v17  ;;  %v1247_v35 = vsel %vm1246_vm12, %v1832_v1, %v1243_v32  ;;  %v141_v32 = vld [vmem:[#allocation9 + $0x2] sm:$0x3] }
 0x8a8   :  { %v1252_v39 = vsel %vm1249_vm9, %v1251_v38, %v1247_v35  ;;  %1530 = vmatpush.msra.mxu0 %v1507_v56  ;;  %v1511_v35 = vld [vmem:[#allocation10 + $0x208] sm:$0xff]  ;;  %v1494_v38 = vld [vmem:[#allocation10 + $0x180] sm:$0xff] }
 0x8a9   :  { %1627 = vmatpush.msra.mxu3 %v1604_v44  ;;  %v1501_v44 = vld [vmem:[#allocation10 + $0x1b8] sm:$0xff] }
 0x8aa   :  { %v749_v23 = vpop.permute.xlu0 %748  ;;  %1741 = vmatmul.msk.f32.vlgmr.msra.gmra.mxu3 %vm161_vm0, %v2200_v33  ;;  %v1193_v33 = vmul.f32 %v2301_v36, %v1192_v51  ;;  %1531 = vmatpush.msra.mxu0 %v1506_v57  ;;  %v1496_v51 = vld [vmem:[#allocation10 + $0x190] sm:$0xff] }
 0x8ab   :  { %v752_v26 = vsel %vm163_vm1, %v751_v10, %v749_v23  ;;  %v1499_v10 = vld [vmem:[#allocation10 + $0x1a8] sm:$0xff]  ;;  %v1498_v23 = vld [vmem:[#allocation10 + $0x1a0] sm:$0xff] }
 0x8ac   :  { %1714 = vmatmul.msk.f32.vlgmr.msrb.gmra.mxu1 %vm179_vm2, %v752_v26  ;;  %1532 = vmatpush.msra.mxu0 %v1505_v8  ;;  %v1514_v26 = vld [vmem:[#allocation10 + $0x220] sm:$0xff] }
 0x8ad   :  { %1417 = vmatpush.msrb.mxu1 %v2325_v14  ;;  %v1253_v14 = vmul.f32 %v2316_v46, %v1252_v39  ;;  %v1510_v39 = vld [vmem:[#allocation10 + $0x200] sm:$0xff] }
 0x8ae   :  { %1533 = vmatpush.msra.mxu0 %v1504_v15 }
 0x8b0   :  { %1534 = vmatpush.msra.mxu0 %v1503_v60  ;;  %v1575_v60 = vld [vmem:[#allocation10 + $0x2b0] sm:$0xff] }
 0x8b2   :  { %1535 = vmatpush.msra.mxu0 %v1502_v2  ;;  %v1570_v2 = vld [vmem:[#allocation10 + $0x288] sm:$0xff] }
 0x8b4   :  { %1733 = vmatmul.msk.f32.vlgmr.msra.gmra.mxu1 %vm692_vm6, %v1193_v33  ;;  %1536 = vmatpush.msra.mxu0 %v1501_v44  ;;  %v1495_v33 = vld [vmem:[#allocation10 + $0x188] sm:$0xff] }
 0x8b5   :  { %1548 = vmatpush.msra.mxu1 %v1525_v52 }
 0x8b6   :  { %1537 = vmatpush.msra.mxu0 %v1500_v59 }
 0x8b7   :  { %1549 = vmatpush.msra.mxu1 %v1524_v4 }
 0x8b8   :  { %1538 = vmatpush.msra.mxu0 %v1499_v10 }
 0x8b9   :  { %1550 = vmatpush.msra.mxu1 %v1523_v22 }
 0x8ba   :  { %1539 = vmatpush.msra.mxu0 %v1498_v23 }
 0x8bb   :  { %1551 = vmatpush.msra.mxu1 %v1522_v24 }
 0x8bc   :  { %1737 = vmatmul.msk.f32.vlgmr.msrb.gmra.mxu1 %vm692_vm6, %v1253_v14  ;;  %1540 = vmatpush.msra.mxu0 %v1497_v29 }
 0x8be   :  { %1541 = vmatpush.msra.mxu0 %v1496_v51 }
 0x8c0   :  { %1542 = vmatpush.msra.mxu0 %v1495_v33 }
 0x8c2   :  { %1543 = vmatpush.msra.mxu0 %v1494_v38 }
 0x8f6   :  { %v1154_v40 = vpop.xlane.xlu1 %1153 }
 0x8f7   :  { %1833 = vrcp.f32 %v1154_v40  ;;  %v1235_v45 = vand.u32 2147483648, %v1154_v40  ;;  %v1233_v36 = vand.u32 2147483647, %v1154_v40  ;;  %vm1229_vm11 = vweird.f32 %v1154_v40 }
 0x8f9   :  { %v1236_v19 = vor.u32 1.1754944e-38, %v1235_v45  ;;  %vm1234_vm15 = vcmp.eq.f32.partialorder %v1233_v36, 8.507059e+37 }
 0x8fd   :  { %v1834_v41 = vpop.eup %1833 }
 0x8fe   :  { %v1225_v43 = vmul.f32 %v1834_v41, %v1154_v40  ;;  %vm1230_vm10 = vweird.f32 %v1834_v41 }
 0x8ff   :  { %vm1231_vm14 = vmor %vm1229_vm11, %vm1230_vm10 }
 0x900   :  { %v1226_v42 = vsub.f32 1.0, %v1225_v43  ;;  %v1576_v43 = vld [vmem:[#allocation10 + $0x2b8] sm:$0xff] }
 0x902   :  { %v1227_v48 = vmul.f32 %v1834_v41, %v1226_v42 }
 0x904   :  { %v1228_v30 = vadd.f32 %v1834_v41, %v1227_v48 }
 0x905   :  { %v1373_v54 = vpop.f32.mrf.mxu3 }
 0x906   :  { %v1232_v49 = vsel %vm1231_vm14, %v1834_v41, %v1228_v30  ;;  %v1475_v63 = vrot.slane %v1373_v54, 7  ;;  %v1577_v41 = vld [vmem:[#allocation10 + $0x2c0] sm:$0xff] }
 0x907   :  { %v1237_v9 = vsel %vm1234_vm15, %v1236_v19, %v1232_v49  ;;  %1591 = vmatpush.msra.mxu2 %v1577_v41 }
 0x908   :  { %v1238_v46 = vmul.f32 %v2334_v62, %v1237_v9  ;;  %v1521_v62 = vld [vmem:[#allocation10 + $0x258] sm:$0xff] }
 0x909   :  { %1552 = vmatpush.msra.mxu1 %v1521_v62  ;;  %1592 = vmatpush.msra.mxu2 %v1576_v43 }
 0x90a   :  { %1736 = vmatmul.msk.f32.vlgmr.msrb.gmra.mxu0 %vm692_vm6, %v1238_v46 }
 0x90b   :  { %1553 = vmatpush.msra.mxu1 %v1520_v25  ;;  %1593 = vmatpush.msra.mxu2 %v1575_v60 }
 0x90d   :  { %1554 = vmatpush.msra.mxu1 %v1519_v61  ;;  %v1574_v61 = vld [vmem:[#allocation10 + $0x2a8] sm:$0xff] }
 0x90e   :  { %1594 = vmatpush.msra.mxu2 %v1574_v61 }
 0x90f   :  { %1555 = vmatpush.msra.mxu1 %v1518_v3 }
 0x911   :  { %1556 = vmatpush.msra.mxu1 %v1517_v37 }
 0x913   :  { %1557 = vmatpush.msra.mxu1 %v1516_v16 }
 0x915   :  { %1558 = vmatpush.msra.mxu1 %v1515_v18 }
 0x916   :  { %v1350_v28 = vpop.f32.mrf.mxu2 }
 0x917   :  { %v1476_v5 = vsel %vm742_vm13, %v1475_v63, %v1350_v28  ;;  %1559 = vmatpush.msra.mxu1 %v1514_v26  ;;  %v1573_v63 = vld [vmem:[#allocation10 + $0x2a0] sm:$0xff] }
 0x918   :  { %1595 = vmatpush.msra.mxu2 %v1573_v63 }
 0x919   :  { %1560 = vmatpush.msra.mxu1 %v1513_v31  ;;  %v1778_v31 = vld [vmem:[#allocation10 + $0x2c8] ss:$0 sm:$0xff] }
 0x91b   :  { %1561 = vmatpush.msra.mxu1 %v1512_v34 }
 0x91d   :  { %1562 = vmatpush.msra.mxu1 %v1511_v35 }
 0x91f   :  { %1563 = vmatpush.msra.mxu1 %v1510_v39 }
 0x920   :  { %v1304_v36 = vpop.f32.mrf.mxu0 }
 0x925   :  { %v1465_v58 = vpop.f32.mrf.mxu3  ;;  %v1442_v1 = vpop.f32.mrf.mxu2 }
 0x926   :  { %v1487_v0 = vrot.slane %v1465_v58, 7 }
 0x928   :  { %v1488_v11 = vsel %vm742_vm13, %v1487_v0, %v1442_v1  ;;  %v1572_v0 = vld [vmem:[#allocation10 + $0x298] sm:$0xff]  ;;  %v1571_v1 = vld [vmem:[#allocation10 + $0x290] sm:$0xff] }
 0x929   :  { %v787_v7 = vpop.f32.mrf.mxu1  ;;  %v1768_v17 = vpack.i.bf16 %v1488_v11, %v1476_v5  ;;  %1596 = vmatpush.msra.mxu2 %v1572_v0 }
 0x92a   :  { %v788_v12 = vadd.f32 %v1775_v20, %v787_v7 }
 0x92b   :  { %1769 = vrot.lane.b32.xlu2 %v1768_v17, %s2036_s7  ;;  %1597 = vmatpush.msra.mxu2 %v1571_v1 }
 0x92c   :  { %1835 = vtanh.f32 %v788_v12  ;;  %v1715_v6 = vmul.f32 -1.442695, %v788_v12  ;;  %v1777_v12 = vld [vmem:[#allocation10 + $0x280] ss:$0 sm:$0xff] }
 0x92d   :  { %1598 = vmatpush.msra.mxu2 %v1570_v2  ;;  %v1629_v29 = vpop.f32.mrf.mxu3 }
 0x92e   :  { %1837 = vpow2.f32 %v1715_v6 }
 0x931   :  { %v1327_v45 = vpop.f32.mrf.mxu1 }
 0x932   :  { %v1836_v27 = vpop.eup %1835  ;;  %v1470_v9 = vrot.slane %v1327_v45, 7 }
 0x933   :  { %816 = vrot.lane.b32.xlu2 %v1836_v27, %s2036_s7  ;;  %v1776_v27 = vld [vmem:[#allocation10 + $0x2f0] ss:$0 sm:$0xff] }
 0x934   :  { %v1838_v14 = vpop.eup %1837  ;;  %v1471_v56 = vsel %vm742_vm13, %v1470_v9, %v1304_v36  ;;  %v1630_v51 = vadd.f32 %v1776_v27, %v1629_v29 }
 0x935   :  { %v793_v40 = vadd.f32 1.0, %v1838_v14 }
 0x936   :  { %v1632_v6 = vmax.f32 %v1630_v51, 0.0 }
 0x937   :  { %1839 = vrcp.f32 %v793_v40  ;;  %v805_v28 = vand.u32 2147483648, %v793_v40  ;;  %vm799_vm3 = vweird.f32 %v793_v40  ;;  %v803_v8 = vand.u32 2147483647, %v793_v40 }
 0x939   :  { %v1419_v19 = vpop.f32.mrf.mxu1  ;;  %v806_v15 = vor.u32 1.1754944e-38, %v805_v28  ;;  %vm804_vm5 = vcmp.eq.f32.partialorder %v803_v8, 8.507059e+37 }
 0x93a   :  { %v1482_v46 = vrot.slane %v1419_v19, 7 }
 0x93b   :  { %811 = vrot.lane.b32.xlu2 %v141_v32, %s2025_s15 }
 0x93d   :  { %v1840_v42 = vpop.eup %1839 }
 0x93e   :  { %v795_v48 = vmul.f32 %v1840_v42, %v793_v40  ;;  %vm800_vm6 = vweird.f32 %v1840_v42 }
 0x93f   :  { %vm801_vm4 = vmor %vm799_vm3, %vm800_vm6 }
 0x940   :  { %v796_v30 = vsub.f32 1.0, %v795_v48 }
 0x942   :  { %v797_v49 = vmul.f32 %v1840_v42, %v796_v30 }
 0x944   :  { %v798_v54 = vadd.f32 %v1840_v42, %v797_v49 }
 0x946   :  { %v802_v62 = vsel %vm801_vm4, %v1840_v42, %v798_v54 }
 0x947   :  { %v807_v58 = vsel %vm804_vm5, %v806_v15, %v802_v62 }
 0x985   :  { %v1770_v50 = vpop.permute.xlu2 %1769 }
 0x986   :  { %v1772_v52 = vunpack.i.h.bf16 %v1770_v50  ;;  %v1771_v53 = vunpack.i.l.bf16 %v1770_v50 }
 0x987   :  { %v1396_v4 = vpop.f32.mrf.mxu0 }
 0x988   :  { %v1483_v22 = vsel %vm742_vm13, %v1482_v46, %v1396_v4  ;;  %v1492_v57 = vsel %vm163_vm1, %v1471_v56, %v1771_v53 }
 0x989   :  { %v1493_v24 = vsel %vm163_vm1, %v1483_v22, %v1772_v52  ;;  %1544 = vmatmul.f32.vlgmr.msra.gmra.mxu0 %v1492_v57 }
 0x98a   :  { %1564 = vmatmul.f32.vlgmr.msra.gmra.mxu1 %v1493_v24 }
 0x98d   :  { %v817_v25 = vpop.permute.xlu2 %816 }
 0x98e   :  { %v819_v20 = vmul.f32 %v817_v25, %v807_v58 }
 0x990   :  { %821 = vrot.lane.b32.xlu0 %v819_v20, %s2025_s15 }
 0x995   :  { %v812_v3 = vpop.permute.xlu2 %811 }
 0x996   :  { %v814_v5 = vmul.f32 %v812_v3, %v807_v58 }
 0xa02   :  { %v822_v7 = vpop.permute.xlu0 %821 }
 0xa03   :  { %v824_v11 = vadd.f32 %v822_v7, %v814_v5 }
 0xa05   :  { %1841 = vtanh.f32 %v824_v11 }
 0xa06   :  { %v1545_v17 = vpop.f32.mrf.mxu0 }
 0xa07   :  { %v1565_v44 = vpop.f32.mrf.mxu1  ;;  %v1546_v37 = vadd.f32 %v1777_v12, %v1545_v17 }
 0xa09   :  { %v1566_v59 = vadd.f32 %v1565_v44, %v1546_v37 }
 0xa0b   :  { %v1842_v16 = vpop.eup %1841  ;;  %v1568_v10 = vadd.f32 %v1566_v59, %v2180_v21 }
 0xa0c   :  { %827 = vrot.lane.b32.xlu2 %v1842_v16, %s2036_s7 }
 0xa0d   :  { %v1569_v18 = vsel %vm161_vm0, %v1568_v10, %v2371_v13 }
 0xa0e   :  { %1740 = vmatmul.msk.f32.vlgmr.msra.gmra.mxu2 %vm163_vm1, %v1569_v18 }
 0xa66   :  { %v828_v23 = vpop.permute.xlu2 %827 }
 0xa67   :  { %v830_v26 = vmul.f32 %v828_v23, %v807_v58 }
 0xa69   :  { %1659 = vrot.lane.b32.xlu2 %v830_v26, %s2036_s7 }
 0xa71   :  { %1667 = vrot.lane.b32.xlu2 %v2121_v47, %s2036_s7 }
 0xa91   :  { %v1600_v32 = vpop.f32.mrf.mxu2 }
 0xa92   :  { %v1601_v21 = vadd.f32 %v1778_v31, %v1600_v32 }
 0xa94   :  { %v1603_v34 = vmax.f32 %v1601_v21, 0.0 }
 0xa96   :  { %v1633_v33 = vadd.f32 %v1632_v6, %v1603_v34 }
 0xa98   :  { %1654 = vrot.lane.b32.xlu0 %v1633_v33, %s2025_s15  ;;  %v1742_v13 = vmul.f32 -1.442695, %v1633_v33 }
 0xa9a   :  { %1843 = vpow2.f32 %v1742_v13 }
 0xaa0   :  { %1671 = vrot.lane.b32.xlu0 %v824_v11, %s2037_s5  ;;  %v1844_v35 = vpop.eup %1843 }
 0xaa1   :  { %v1637_v38 = vadd.f32 1.0, %v1844_v35 }
 0xaa3   :  { %1845 = vrcp.f32 %v1637_v38  ;;  %v1649_v43 = vand.u32 2147483648, %v1637_v38  ;;  %vm1643_vm8 = vweird.f32 %v1637_v38  ;;  %v1647_v42 = vand.u32 2147483647, %v1637_v38 }
 0xaa5   :  { %v1650_v48 = vor.u32 1.1754944e-38, %v1649_v43  ;;  %vm1648_vm9 = vcmp.eq.f32.partialorder %v1647_v42, 8.507059e+37 }
 0xaa9   :  { %v1846_v39 = vpop.eup %1845 }
 0xaaa   :  { %v1639_v47 = vmul.f32 %v1846_v39, %v1637_v38  ;;  %vm1644_vm13 = vweird.f32 %v1846_v39 }
 0xaab   :  { %vm1645_vm12 = vmor %vm1643_vm8, %vm1644_vm13 }
 0xaac   :  { %v1640_v14 = vsub.f32 1.0, %v1639_v47 }
 0xaae   :  { %v1641_v40 = vmul.f32 %v1846_v39, %v1640_v14 }
 0xab0   :  { %v1642_v41 = vadd.f32 %v1846_v39, %v1641_v40 }
 0xab2   :  { %v1646_v45 = vsel %vm1645_vm12, %v1846_v39, %v1642_v41 }
 0xab3   :  { %v1651_v36 = vsel %vm1648_vm9, %v1650_v48, %v1646_v45 }
 0xac3   :  { %v1660_v49 = vpop.permute.xlu2 %1659 }
 0xac4   :  { %v1674_v50 = vsel %vm161_vm0, %v2126_v55, %v1660_v49 }
 0xacb   :  { %v1668_v53 = vpop.permute.xlu2 %1667 }
 0xb0a   :  { %v1655_v30 = vpop.permute.xlu0 %1654 }
 0xb0b   :  { %v1657_v19 = vmul.f32 %v1655_v30, %v1651_v36 }
 0xb0d   :  { %1663 = vrot.lane.b32.xlu1 %v1657_v19, %s2025_s15 }
 0xb12   :  { %v1672_v9 = vpop.permute.xlu0 %1671 }
 0xb13   :  { %v1677_v46 = vsel %vm161_vm0, %v1672_v9, 0.0 }
 0xb14   :  { %v1680_v4 = vrot.slane %v1677_v46, 6 }
 0xb7f   :  { %v1664_v52 = vpop.permute.xlu1 %1663 }
 0xb80   :  { %v1675_v54 = vsel %vm163_vm1, %v1674_v50, %v1664_v52 }
 0xb81   :  { %v1676_v56 = vsel %vm179_vm2, %v1675_v54, %v1668_v53 }
 0xb82   :  { %v1681_v22 = vsel %vm275_vm7, %v1676_v56, %v1680_v4 }
 0xb83   :  { %1683 = vst [vmem:[%s2433_s8] sm:$0xf] %v1681_v22 }
 0xb84   :  { %1688 = vsyncpa [#allocation3], 1 }
 0xb85   :  { %1689 = vsyncpa [#allocation5], 1 }
 0xb86   :  { %1690 = vsyncpa [#allocation8], 1 }
 0xb87   :  { %1691 = vsyncpa [#allocation11], 1 }

</bundles_post_ra>
